<compile_context>
chip_gen: v6e
topology: v6e:2x2x1
jax: 0.10.0
libtpu: 0.0.40
codegen_flags: <defaults>
</compile_context>

<pallas_src>
import jax
import jax.numpy as jnp
from jax.experimental import pallas as pl
from jax.experimental.pallas import tpu as pltpu

IN_FEATURES = 784
LATENT = 16

# Mid-blob layout: (row_offset, in_dim, out_dim), zero-padded into one
# [720, 256] bf16 buffer.  Compute order:
#   enc2, enc3, enc4, fused(enc5|enc51), dec1, dec2, dec3, dec4
# Row offsets/sizes are multiples of 16 so bf16 sublane tiles stay aligned.
_MID_LAYOUT = (
    (0,   256, 128),   # enc2
    (256, 128, 64),    # enc3
    (384, 64,  32),    # enc4
    (448, 32,  32),    # enc5|enc51 fused heads (cols 0:16 = mu, 16:32 = logvar)
    (480, 16,  32),    # dec1
    (496, 32,  64),    # dec2
    (528, 64,  128),   # dec3
    (592, 128, 256),   # dec4
)
_MID_ROWS = 720
_MID_COLS = 256
_N_BIAS = 10           # enc1..enc4, fused heads, dec1..dec5


def vae_kernel(x_ref, eps_ref, w1_ref, wd5_ref, wmid_ref, b_ref,
               recon_ref, mu_ref, logvar_ref):
    """Whole VAE forward for one batch tile; all operands VMEM-resident."""

    def bias(row, width):
        # [1, width] f32 row from the packed bias blob
        return b_ref[pl.ds(row, 1), pl.ds(0, width)]

    def mid(h, idx, bias_row, relu=True):
        r0, rin, cout = _MID_LAYOUT[idx]
        w = wmid_ref[pl.ds(r0, rin), pl.ds(0, cout)]           # bf16 [rin, cout]
        acc = jnp.dot(h.astype(jnp.bfloat16), w,
                      preferred_element_type=jnp.float32) + bias(bias_row, cout)
        return jnp.maximum(acc, 0.0) if relu else acc

    # ---- encoder ----
    h = jnp.dot(x_ref[...].astype(jnp.bfloat16), w1_ref[...],
                preferred_element_type=jnp.float32) + bias(0, 256)
    h = jnp.maximum(h, 0.0)
    h = mid(h, 0, 1)                     # enc2
    h = mid(h, 1, 2)                     # enc3
    h = mid(h, 2, 3)                     # enc4

    ml = mid(h, 3, 4, relu=False)        # fused heads -> [tb, 32]
    mu = ml[:, :LATENT]
    logvar = ml[:, LATENT:2 * LATENT]

    # ---- reparameterize: z = mu + eps * exp(0.5 * logvar) ----
    z = mu + eps_ref[...] * jnp.exp(0.5 * logvar)

    # ---- decoder ----
    d = mid(z, 4, 5)                     # dec1
    d = mid(d, 5, 6)                     # dec2
    d = mid(d, 6, 7)                     # dec3
    d = mid(d, 7, 8)                     # dec4
    logits = jnp.dot(d.astype(jnp.bfloat16), wd5_ref[...],
                     preferred_element_type=jnp.float32) + bias(9, IN_FEATURES)

    recon_ref[...] = jax.nn.sigmoid(logits)
    mu_ref[...] = mu
    logvar_ref[...] = logvar


# ----------------------------- parameter handling -----------------------------
_LAYER_DIMS = [(784, 256), (256, 128), (128, 64), (64, 32),      # enc1..enc4
               (32, 16), (32, 16),                               # enc5 (mu), enc51 (logvar)
               (16, 32), (32, 64), (64, 128), (128, 256), (256, 784)]  # dec1..dec5


def init_linear(key, fan_in, fan_out):
    """Deterministic init mimicking torch.nn.Linear (uniform +/- 1/sqrt(fan_in))."""
    kw, kb = jax.random.split(key)
    bound = 1.0 / jnp.sqrt(jnp.float32(fan_in))
    # stored transposed relative to torch ([in, out]) so the kernel does h @ W
    w = jax.random.uniform(kw, (fan_in, fan_out), jnp.float32, -bound, bound)
    b = jax.random.uniform(kb, (fan_out,), jnp.float32, -bound, bound)
    return w, b


def build_params(key):
    keys = jax.random.split(key, len(_LAYER_DIMS))
    return [init_linear(k, fi, fo) for k, (fi, fo) in zip(keys, _LAYER_DIMS)]


def pack_params(params):
    """Pack the 11 (w, b) pairs into 4 kernel buffers (bf16 weights, f32 biases)."""
    ((w1, b1), (w2, b2), (w3, b3), (w4, b4), (w5, b5), (w51, b51),
     (wd1, bd1), (wd2, bd2), (wd3, bd3), (wd4, bd4), (wd5, bd5)) = params

    # Fuse the mu / logvar heads into a single [32, 32] layer.
    w_heads = jnp.concatenate([w5, w51], axis=1)
    b_heads = jnp.concatenate([b5, b51], axis=0)

    mids = [w2, w3, w4, w_heads, wd1, wd2, wd3, wd4]
    wmid = jnp.zeros((_MID_ROWS, _MID_COLS), jnp.bfloat16)
    for (r0, rin, cout), w in zip(_MID_LAYOUT, mids):
        assert w.shape == (rin, cout)
        wmid = wmid.at[r0:r0 + rin, :cout].set(w.astype(jnp.bfloat16))

    biases = [b1, b2, b3, b4, b_heads, bd1, bd2, bd3, bd4, bd5]
    ball = jnp.zeros((_N_BIAS, IN_FEATURES), jnp.float32)
    for k, b in enumerate(biases):
        ball = ball.at[k, :b.shape[0]].set(b)

    return (w1.astype(jnp.bfloat16), wd5.astype(jnp.bfloat16), wmid, ball)


# --------------------------------- forward ------------------------------------
def _round_up(n, m):
    return ((n + m - 1) // m) * m


def vae_forward(x, eps, packed, tile_b=128):
    """x: [B, ...] flattened to [B, 784]. eps: [B, 16] ~ N(0,1). Returns (recon, mu, logvar)."""
    w1, wd5, wmid, ball = packed
    B = x.shape[0]
    x2d = x.reshape(B, IN_FEATURES).astype(jnp.float32)
    eps = eps.astype(jnp.float32)

    # Batch tile: multiple of 8 sublanes; pad the batch so the grid divides it.
    tb = min(int(tile_b), _round_up(B, 8))
    Bp = _round_up(B, tb)
    if Bp != B:
        x2d = jnp.pad(x2d, ((0, Bp - B), (0, 0)))
        eps = jnp.pad(eps, ((0, Bp - B), (0, 0)))
    grid = (Bp // tb,)

    def data_spec(feat):
        return pl.BlockSpec((tb, feat), lambda i: (i, 0))

    def resident_spec(arr):
        # Same block index every grid step -> stays resident in VMEM across tiles.
        return pl.BlockSpec(arr.shape, lambda i: (0, 0))

    out_shapes = (
        jax.ShapeDtypeStruct((Bp, IN_FEATURES), jnp.float32),   # recon
        jax.ShapeDtypeStruct((Bp, LATENT), jnp.float32),        # mu
        jax.ShapeDtypeStruct((Bp, LATENT), jnp.float32),        # logvar
    )

    fn = pl.pallas_call(
        vae_kernel,
        out_shape=out_shapes,
        grid=grid,
        in_specs=[
            data_spec(IN_FEATURES),    # x
            data_spec(LATENT),         # eps
            resident_spec(w1),         # enc1 weight (bf16)
            resident_spec(wd5),        # dec5 weight (bf16)
            resident_spec(wmid),       # packed small weights (bf16)
            resident_spec(ball),       # packed biases (f32)
        ],
        out_specs=(data_spec(IN_FEATURES), data_spec(LATENT), data_spec(LATENT)),
        compiler_params=pltpu.CompilerParams(
            dimension_semantics=("parallel",),   # independent batch tiles
            vmem_limit_bytes=16 << 20,           # ~3 MiB actual; leaves headroom on v7x (64 MiB)
        ),
    )
    recon, mu, logvar = fn(x2d, eps, w1, wd5, wmid, ball)
    if Bp != B:
        recon, mu, logvar = recon[:B], mu[:B], logvar[:B]
    return recon, mu, logvar


if __name__ == "__main__":
    key = jax.random.PRNGKey(0)
    k_params, k_x, k_eps = jax.random.split(key, 3)

    B = 8
    params = build_params(k_params)
    packed = pack_params(params)

    # input shaped like a batch of MNIST images; forward does x.view(-1, 784)
    x = jax.random.uniform(k_x, (B, 1, 28, 28), jnp.float32)
    # eps ~ N(0,1) generated outside the kernel (torch.randn_like equivalent),
    # passed in so the kernel stays deterministic.
    eps = jax.random.normal(k_eps, (B, LATENT), jnp.float32)

    recon, mu, logvar = vae_forward(x, eps, packed)
    jax.block_until_ready((recon, mu, logvar))

    # pure-JAX reference mirroring the kernel numerics (bf16 weights/activations,
    # f32 accumulation)
    def ref_forward(x, eps, params):
        def lin(h, w, b):
            return jnp.dot(h.astype(jnp.bfloat16), w.astype(jnp.bfloat16),
                           preferred_element_type=jnp.float32) + b
        ((w1, b1), (w2, b2), (w3, b3), (w4, b4), (w5, b5), (w51, b51),
         (wd1, bd1), (wd2, bd2), (wd3, bd3), (wd4, bd4), (wd5, bd5)) = params
        h = x.reshape(x.shape[0], IN_FEATURES)
        h = jnp.maximum(lin(h, w1, b1), 0.0)
        h = jnp.maximum(lin(h, w2, b2), 0.0)
        h = jnp.maximum(lin(h, w3, b3), 0.0)
        h = jnp.maximum(lin(h, w4, b4), 0.0)
        mu_r = lin(h, w5, b5)
        logvar_r = lin(h, w51, b51)
        z = mu_r + eps * jnp.exp(0.5 * logvar_r)
        d = jnp.maximum(lin(z, wd1, bd1), 0.0)
        d = jnp.maximum(lin(d, wd2, bd2), 0.0)
        d = jnp.maximum(lin(d, wd3, bd3), 0.0)
        d = jnp.maximum(lin(d, wd4, bd4), 0.0)
        return jax.nn.sigmoid(lin(d, wd5, bd5)), mu_r, logvar_r

    r_ref, mu_ref_v, lv_ref_v = ref_forward(x, eps, params)
    assert recon.shape == (B, IN_FEATURES)
    assert mu.shape == (B, LATENT) and logvar.shape == (B, LATENT)
    assert jnp.allclose(recon, r_ref, atol=2e-3, rtol=2e-3), "recon mismatch"
    assert jnp.allclose(mu, mu_ref_v, atol=2e-3, rtol=2e-3), "mu mismatch"
    assert jnp.allclose(logvar, lv_ref_v, atol=2e-3, rtol=2e-3), "logvar mismatch"

    print("KERNEL_OK")
</pallas_src>

<mosaic_0001>
module attributes {stable_mosaic.version = 11 : i64} {
  func.func @vae_kernel(%arg0: i32, %arg1: memref<8x784xf32, #tpu.memory_space<vmem>>, %arg2: memref<8x16xf32, #tpu.memory_space<vmem>>, %arg3: memref<784x256xbf16, #tpu.memory_space<vmem>>, %arg4: memref<256x784xbf16, #tpu.memory_space<vmem>>, %arg5: memref<720x256xbf16, #tpu.memory_space<vmem>>, %arg6: memref<10x784xf32, #tpu.memory_space<vmem>>, %arg7: memref<8x784xf32, #tpu.memory_space<vmem>>, %arg8: memref<8x16xf32, #tpu.memory_space<vmem>>, %arg9: memref<8x16xf32, #tpu.memory_space<vmem>>) attributes {dimension_semantics = [#tpu.dimension_semantics<parallel>], iteration_bounds = array<i64: 1>, scalar_prefetch = 0 : i64, scratch_operands = 0 : i64, tpu.core_type = #tpu.core_type<tc>, window_params = [{transform_indices = @transform_0, window_bounds = array<i64: 8, 784>}, {transform_indices = @transform_1, window_bounds = array<i64: 8, 16>}, {pipeline_mode = #tpu.pipeline_mode<synchronous>, transform_indices = @transform_2, window_bounds = array<i64: 784, 256>}, {pipeline_mode = #tpu.pipeline_mode<synchronous>, transform_indices = @transform_3, window_bounds = array<i64: 256, 784>}, {pipeline_mode = #tpu.pipeline_mode<synchronous>, transform_indices = @transform_4, window_bounds = array<i64: 720, 256>}, {pipeline_mode = #tpu.pipeline_mode<synchronous>, transform_indices = @transform_5, window_bounds = array<i64: 10, 784>}, {transform_indices = @transform_6, window_bounds = array<i64: 8, 784>}, {transform_indices = @transform_7, window_bounds = array<i64: 8, 16>}, {transform_indices = @transform_8, window_bounds = array<i64: 8, 16>}]} {
    %c0 = arith.constant 0 : index
    %c0_0 = arith.constant 0 : index
    %0 = vector.load %arg1[%c0, %c0_0] : memref<8x784xf32, #tpu.memory_space<vmem>>, vector<8x784xf32>
    %1 = arith.truncf %0 : vector<8x784xf32> to vector<8x784xbf16>
    %c0_1 = arith.constant 0 : index
    %c0_2 = arith.constant 0 : index
    %2 = vector.load %arg3[%c0_1, %c0_2] : memref<784x256xbf16, #tpu.memory_space<vmem>>, vector<784x256xbf16>
    %cst = arith.constant dense<0.000000e+00> : vector<8x256xf32>
    %3 = tpu.matmul %1, %2, %cst {dimension_numbers = #tpu.dot_dimension_numbers<[1], [0], [0], [1], [0, 0, 1, 1], [], []>} : vector<8x784xbf16>, vector<784x256xbf16>, vector<8x256xf32> -> vector<8x256xf32>
    %c0_3 = arith.constant 0 : index
    %c0_4 = arith.constant 0 : index
    %4 = vector.load %arg6[%c0_3, %c0_4] : memref<10x784xf32, #tpu.memory_space<vmem>>, vector<1x256xf32>
    %5 = vector.broadcast %4 : vector<1x256xf32> to vector<8x256xf32>
    %6 = arith.addf %3, %5 : vector<8x256xf32>
    %cst_5 = arith.constant 0.000000e+00 : f32
    %7 = vector.broadcast %cst_5 : f32 to vector<8x256xf32>
    %8 = arith.maximumf %6, %7 : vector<8x256xf32>
    %c0_6 = arith.constant 0 : index
    %c0_7 = arith.constant 0 : index
    %9 = vector.load %arg5[%c0_6, %c0_7] : memref<720x256xbf16, #tpu.memory_space<vmem>>, vector<256x128xbf16>
    %10 = arith.truncf %8 : vector<8x256xf32> to vector<8x256xbf16>
    %cst_8 = arith.constant dense<0.000000e+00> : vector<8x128xf32>
    %11 = tpu.matmul %10, %9, %cst_8 {dimension_numbers = #tpu.dot_dimension_numbers<[1], [0], [0], [1], [0, 0, 1, 1], [], []>} : vector<8x256xbf16>, vector<256x128xbf16>, vector<8x128xf32> -> vector<8x128xf32>
    %c1 = arith.constant 1 : index
    %c0_9 = arith.constant 0 : index
    %12 = vector.load %arg6[%c1, %c0_9] : memref<10x784xf32, #tpu.memory_space<vmem>>, vector<1x128xf32>
    %13 = vector.broadcast %12 : vector<1x128xf32> to vector<8x128xf32>
    %14 = arith.addf %11, %13 : vector<8x128xf32>
    %cst_10 = arith.constant 0.000000e+00 : f32
    %15 = vector.broadcast %cst_10 : f32 to vector<8x128xf32>
    %16 = arith.maximumf %14, %15 : vector<8x128xf32>
    %c256 = arith.constant 256 : index
    %c0_11 = arith.constant 0 : index
    %17 = vector.load %arg5[%c256, %c0_11] : memref<720x256xbf16, #tpu.memory_space<vmem>>, vector<128x64xbf16>
    %18 = arith.truncf %16 : vector<8x128xf32> to vector<8x128xbf16>
    %cst_12 = arith.constant dense<0.000000e+00> : vector<8x64xf32>
    %19 = tpu.matmul %18, %17, %cst_12 {dimension_numbers = #tpu.dot_dimension_numbers<[1], [0], [0], [1], [0, 0, 1, 1], [], []>} : vector<8x128xbf16>, vector<128x64xbf16>, vector<8x64xf32> -> vector<8x64xf32>
    %c2 = arith.constant 2 : index
    %c0_13 = arith.constant 0 : index
    %20 = vector.load %arg6[%c2, %c0_13] : memref<10x784xf32, #tpu.memory_space<vmem>>, vector<1x64xf32>
    %21 = vector.broadcast %20 : vector<1x64xf32> to vector<8x64xf32>
    %22 = arith.addf %19, %21 : vector<8x64xf32>
    %cst_14 = arith.constant 0.000000e+00 : f32
    %23 = vector.broadcast %cst_14 : f32 to vector<8x64xf32>
    %24 = arith.maximumf %22, %23 : vector<8x64xf32>
    %c384 = arith.constant 384 : index
    %c0_15 = arith.constant 0 : index
    %25 = vector.load %arg5[%c384, %c0_15] : memref<720x256xbf16, #tpu.memory_space<vmem>>, vector<64x32xbf16>
    %26 = arith.truncf %24 : vector<8x64xf32> to vector<8x64xbf16>
    %cst_16 = arith.constant dense<0.000000e+00> : vector<8x32xf32>
    %27 = tpu.matmul %26, %25, %cst_16 {dimension_numbers = #tpu.dot_dimension_numbers<[1], [0], [0], [1], [0, 0, 1, 1], [], []>} : vector<8x64xbf16>, vector<64x32xbf16>, vector<8x32xf32> -> vector<8x32xf32>
    %c3 = arith.constant 3 : index
    %c0_17 = arith.constant 0 : index
    %28 = vector.load %arg6[%c3, %c0_17] : memref<10x784xf32, #tpu.memory_space<vmem>>, vector<1x32xf32>
    %29 = vector.broadcast %28 : vector<1x32xf32> to vector<8x32xf32>
    %30 = arith.addf %27, %29 : vector<8x32xf32>
    %cst_18 = arith.constant 0.000000e+00 : f32
    %31 = vector.broadcast %cst_18 : f32 to vector<8x32xf32>
    %32 = arith.maximumf %30, %31 : vector<8x32xf32>
    %c448 = arith.constant 448 : index
    %c0_19 = arith.constant 0 : index
    %33 = vector.load %arg5[%c448, %c0_19] : memref<720x256xbf16, #tpu.memory_space<vmem>>, vector<32x32xbf16>
    %34 = arith.truncf %32 : vector<8x32xf32> to vector<8x32xbf16>
    %cst_20 = arith.constant dense<0.000000e+00> : vector<8x32xf32>
    %35 = tpu.matmul %34, %33, %cst_20 {dimension_numbers = #tpu.dot_dimension_numbers<[1], [0], [0], [1], [0, 0, 1, 1], [], []>} : vector<8x32xbf16>, vector<32x32xbf16>, vector<8x32xf32> -> vector<8x32xf32>
    %c4 = arith.constant 4 : index
    %c0_21 = arith.constant 0 : index
    %36 = vector.load %arg6[%c4, %c0_21] : memref<10x784xf32, #tpu.memory_space<vmem>>, vector<1x32xf32>
    %37 = vector.broadcast %36 : vector<1x32xf32> to vector<8x32xf32>
    %38 = arith.addf %35, %37 : vector<8x32xf32>
    %39 = vector.extract_strided_slice %38 {offsets = [0, 0], sizes = [8, 16], strides = [1, 1]} : vector<8x32xf32> to vector<8x16xf32>
    %40 = vector.extract_strided_slice %38 {offsets = [0, 16], sizes = [8, 16], strides = [1, 1]} : vector<8x32xf32> to vector<8x16xf32>
    %c0_22 = arith.constant 0 : index
    %c0_23 = arith.constant 0 : index
    %41 = vector.load %arg2[%c0_22, %c0_23] : memref<8x16xf32, #tpu.memory_space<vmem>>, vector<8x16xf32>
    %cst_24 = arith.constant 5.000000e-01 : f32
    %42 = vector.broadcast %cst_24 : f32 to vector<8x16xf32>
    %43 = arith.mulf %42, %40 : vector<8x16xf32>
    %44 = math.exp %43 : vector<8x16xf32>
    %45 = arith.mulf %41, %44 : vector<8x16xf32>
    %46 = arith.addf %39, %45 : vector<8x16xf32>
    %c480 = arith.constant 480 : index
    %c0_25 = arith.constant 0 : index
    %47 = vector.load %arg5[%c480, %c0_25] : memref<720x256xbf16, #tpu.memory_space<vmem>>, vector<16x32xbf16>
    %48 = arith.truncf %46 : vector<8x16xf32> to vector<8x16xbf16>
    %cst_26 = arith.constant dense<0.000000e+00> : vector<8x32xf32>
    %49 = tpu.matmul %48, %47, %cst_26 {dimension_numbers = #tpu.dot_dimension_numbers<[1], [0], [0], [1], [0, 0, 1, 1], [], []>} : vector<8x16xbf16>, vector<16x32xbf16>, vector<8x32xf32> -> vector<8x32xf32>
    %c5 = arith.constant 5 : index
    %c0_27 = arith.constant 0 : index
    %50 = vector.load %arg6[%c5, %c0_27] : memref<10x784xf32, #tpu.memory_space<vmem>>, vector<1x32xf32>
    %51 = vector.broadcast %50 : vector<1x32xf32> to vector<8x32xf32>
    %52 = arith.addf %49, %51 : vector<8x32xf32>
    %cst_28 = arith.constant 0.000000e+00 : f32
    %53 = vector.broadcast %cst_28 : f32 to vector<8x32xf32>
    %54 = arith.maximumf %52, %53 : vector<8x32xf32>
    %c496 = arith.constant 496 : index
    %c0_29 = arith.constant 0 : index
    %55 = vector.load %arg5[%c496, %c0_29] : memref<720x256xbf16, #tpu.memory_space<vmem>>, vector<32x64xbf16>
    %56 = arith.truncf %54 : vector<8x32xf32> to vector<8x32xbf16>
    %cst_30 = arith.constant dense<0.000000e+00> : vector<8x64xf32>
    %57 = tpu.matmul %56, %55, %cst_30 {dimension_numbers = #tpu.dot_dimension_numbers<[1], [0], [0], [1], [0, 0, 1, 1], [], []>} : vector<8x32xbf16>, vector<32x64xbf16>, vector<8x64xf32> -> vector<8x64xf32>
    %c6 = arith.constant 6 : index
    %c0_31 = arith.constant 0 : index
    %58 = vector.load %arg6[%c6, %c0_31] : memref<10x784xf32, #tpu.memory_space<vmem>>, vector<1x64xf32>
    %59 = vector.broadcast %58 : vector<1x64xf32> to vector<8x64xf32>
    %60 = arith.addf %57, %59 : vector<8x64xf32>
    %cst_32 = arith.constant 0.000000e+00 : f32
    %61 = vector.broadcast %cst_32 : f32 to vector<8x64xf32>
    %62 = arith.maximumf %60, %61 : vector<8x64xf32>
    %c528 = arith.constant 528 : index
    %c0_33 = arith.constant 0 : index
    %63 = vector.load %arg5[%c528, %c0_33] : memref<720x256xbf16, #tpu.memory_space<vmem>>, vector<64x128xbf16>
    %64 = arith.truncf %62 : vector<8x64xf32> to vector<8x64xbf16>
    %cst_34 = arith.constant dense<0.000000e+00> : vector<8x128xf32>
    %65 = tpu.matmul %64, %63, %cst_34 {dimension_numbers = #tpu.dot_dimension_numbers<[1], [0], [0], [1], [0, 0, 1, 1], [], []>} : vector<8x64xbf16>, vector<64x128xbf16>, vector<8x128xf32> -> vector<8x128xf32>
    %c7 = arith.constant 7 : index
    %c0_35 = arith.constant 0 : index
    %66 = vector.load %arg6[%c7, %c0_35] : memref<10x784xf32, #tpu.memory_space<vmem>>, vector<1x128xf32>
    %67 = vector.broadcast %66 : vector<1x128xf32> to vector<8x128xf32>
    %68 = arith.addf %65, %67 : vector<8x128xf32>
    %cst_36 = arith.constant 0.000000e+00 : f32
    %69 = vector.broadcast %cst_36 : f32 to vector<8x128xf32>
    %70 = arith.maximumf %68, %69 : vector<8x128xf32>
    %c592 = arith.constant 592 : index
    %c0_37 = arith.constant 0 : index
    %71 = vector.load %arg5[%c592, %c0_37] : memref<720x256xbf16, #tpu.memory_space<vmem>>, vector<128x256xbf16>
    %72 = arith.truncf %70 : vector<8x128xf32> to vector<8x128xbf16>
    %cst_38 = arith.constant dense<0.000000e+00> : vector<8x256xf32>
    %73 = tpu.matmul %72, %71, %cst_38 {dimension_numbers = #tpu.dot_dimension_numbers<[1], [0], [0], [1], [0, 0, 1, 1], [], []>} : vector<8x128xbf16>, vector<128x256xbf16>, vector<8x256xf32> -> vector<8x256xf32>
    %c8 = arith.constant 8 : index
    %c0_39 = arith.constant 0 : index
    %74 = vector.load %arg6[%c8, %c0_39] : memref<10x784xf32, #tpu.memory_space<vmem>>, vector<1x256xf32>
    %75 = vector.broadcast %74 : vector<1x256xf32> to vector<8x256xf32>
    %76 = arith.addf %73, %75 : vector<8x256xf32>
    %cst_40 = arith.constant 0.000000e+00 : f32
    %77 = vector.broadcast %cst_40 : f32 to vector<8x256xf32>
    %78 = arith.maximumf %76, %77 : vector<8x256xf32>
    %79 = arith.truncf %78 : vector<8x256xf32> to vector<8x256xbf16>
    %c0_41 = arith.constant 0 : index
    %c0_42 = arith.constant 0 : index
    %80 = vector.load %arg4[%c0_41, %c0_42] : memref<256x784xbf16, #tpu.memory_space<vmem>>, vector<256x784xbf16>
    %cst_43 = arith.constant dense<0.000000e+00> : vector<8x784xf32>
    %81 = tpu.matmul %79, %80, %cst_43 {dimension_numbers = #tpu.dot_dimension_numbers<[1], [0], [0], [1], [0, 0, 1, 1], [], []>} : vector<8x256xbf16>, vector<256x784xbf16>, vector<8x784xf32> -> vector<8x784xf32>
    %c9 = arith.constant 9 : index
    %c0_44 = arith.constant 0 : index
    %82 = vector.load %arg6[%c9, %c0_44] : memref<10x784xf32, #tpu.memory_space<vmem>>, vector<1x784xf32>
    %83 = vector.broadcast %82 : vector<1x784xf32> to vector<8x784xf32>
    %84 = arith.addf %81, %83 : vector<8x784xf32>
    %85 = arith.negf %84 : vector<8x784xf32>
    %86 = math.exp %85 : vector<8x784xf32>
    %cst_45 = arith.constant 1.000000e+00 : f32
    %87 = vector.broadcast %cst_45 : f32 to vector<8x784xf32>
    %88 = arith.addf %87, %86 : vector<8x784xf32>
    %89 = arith.divf %87, %88 : vector<8x784xf32>
    %c0_46 = arith.constant 0 : index
    %c0_47 = arith.constant 0 : index
    %90 = vector.load %arg7[%c0_46, %c0_47] : memref<8x784xf32, #tpu.memory_space<vmem>>, vector<8x784xf32>
    tpu.vector_store %arg7[%c0_46, %c0_47], %89 {strides = array<i32>} : memref<8x784xf32, #tpu.memory_space<vmem>>, vector<8x784xf32>,
    %c0_48 = arith.constant 0 : index
    %c0_49 = arith.constant 0 : index
    %91 = vector.load %arg8[%c0_48, %c0_49] : memref<8x16xf32, #tpu.memory_space<vmem>>, vector<8x16xf32>
    tpu.vector_store %arg8[%c0_48, %c0_49], %39 {strides = array<i32>} : memref<8x16xf32, #tpu.memory_space<vmem>>, vector<8x16xf32>,
    %c0_50 = arith.constant 0 : index
    %c0_51 = arith.constant 0 : index
    %92 = vector.load %arg9[%c0_50, %c0_51] : memref<8x16xf32, #tpu.memory_space<vmem>>, vector<8x16xf32>
    tpu.vector_store %arg9[%c0_50, %c0_51], %40 {strides = array<i32>} : memref<8x16xf32, #tpu.memory_space<vmem>>, vector<8x16xf32>,
    return
  }
  func.func @transform_0(%arg0: i32) -> (i32, i32) {
    %c0_i32 = arith.constant 0 : i32
    %c0_i32_0 = arith.constant 0 : i32
    return %arg0, %c0_i32 : i32, i32
  }
  func.func @transform_1(%arg0: i32) -> (i32, i32) {
    %c0_i32 = arith.constant 0 : i32
    %c0_i32_0 = arith.constant 0 : i32
    return %arg0, %c0_i32 : i32, i32
  }
  func.func @transform_2(%arg0: i32) -> (i32, i32) {
    %c0_i32 = arith.constant 0 : i32
    %c0_i32_0 = arith.constant 0 : i32
    %c0_i32_1 = arith.constant 0 : i32
    return %c0_i32, %c0_i32_0 : i32, i32
  }
  func.func @transform_3(%arg0: i32) -> (i32, i32) {
    %c0_i32 = arith.constant 0 : i32
    %c0_i32_0 = arith.constant 0 : i32
    %c0_i32_1 = arith.constant 0 : i32
    return %c0_i32, %c0_i32_0 : i32, i32
  }
  func.func @transform_4(%arg0: i32) -> (i32, i32) {
    %c0_i32 = arith.constant 0 : i32
    %c0_i32_0 = arith.constant 0 : i32
    %c0_i32_1 = arith.constant 0 : i32
    return %c0_i32, %c0_i32_0 : i32, i32
  }
  func.func @transform_5(%arg0: i32) -> (i32, i32) {
    %c0_i32 = arith.constant 0 : i32
    %c0_i32_0 = arith.constant 0 : i32
    %c0_i32_1 = arith.constant 0 : i32
    return %c0_i32, %c0_i32_0 : i32, i32
  }
  func.func @transform_6(%arg0: i32) -> (i32, i32) {
    %c0_i32 = arith.constant 0 : i32
    %c0_i32_0 = arith.constant 0 : i32
    return %arg0, %c0_i32 : i32, i32
  }
  func.func @transform_7(%arg0: i32) -> (i32, i32) {
    %c0_i32 = arith.constant 0 : i32
    %c0_i32_0 = arith.constant 0 : i32
    return %arg0, %c0_i32 : i32, i32
  }
  func.func @transform_8(%arg0: i32) -> (i32, i32) {
    %c0_i32 = arith.constant 0 : i32
    %c0_i32_0 = arith.constant 0 : i32
    return %arg0, %c0_i32 : i32, i32
  }
}

</mosaic_0001>

<bundles_post_ra>
// kernel: tpu_custom_call.1
= control target key start
LH: loop header
LB: loop body
LE: loop exit
PB: predicated region body
PF: predicated region fallthrough
CT: control target
= control target key end

     0   :  { %14 = vsyncpa [#allocation3], 0  ;;  %vm643_vm0 = vcmask 130048   ;;  %s4465_s0 = inlined_call_operand.vmem [shape: f32[8,784], index: 0, kind: input, shape index: {}]   ;;  %s4466_s1 = inlined_call_operand.vmem [shape: f32[8,16], index: 1, kind: input, shape index: {}]   ;;  %s4467_s2 = inlined_call_operand.vmem [shape: bf16[784,256], index: 2, kind: input, shape index: {}]   ;;  %s4468_s3 = inlined_call_operand.vmem [shape: bf16[256,784], index: 3, kind: input, shape index: {}]   ;;  %s4469_s4 = inlined_call_operand.vmem [shape: bf16[720,256], index: 4, kind: input, shape index: {}]   ;;  %s4470_s5 = inlined_call_operand.vmem [shape: f32[10,784], index: 5, kind: input, shape index: {}]   ;;  %s4471_s6 = inlined_call_operand.hbm [shape: f32[8,784], index: 6, kind: output, shape index: {0}]   ;;  %s4472_s7 = inlined_call_operand.hbm [shape: f32[8,16], index: 7, kind: output, shape index: {1}]   ;;  %s4473_s8 = inlined_call_operand.hbm [shape: f32[8,16], index: 8, kind: output, shape index: {2}]  }
   0x1   :  { %v3018_v0 = vld [vmem:[%s4467_s2 + $0x74] ss:$8 sps:$4 sm:$0xff]   ;;  %v3020_v1 = vld [vmem:[%s4467_s2 + $0x70] ss:$8 sps:$4 sm:$0xff]   ;;  %v3024_v4 = vld [vmem:[%s4467_s2 + $0x64] ss:$8 sps:$4 sm:$0xff]  }
   0x2   :  { %647 = vmatprep.subr.bf16.mxu0 %v3018_v0  ;;  %v3021_v2 = vld [vmem:[%s4467_s2 + $0x174] ss:$8 sps:$4 sm:$0xff]   ;;  %v3023_v3 = vld [vmem:[%s4467_s2 + $0x170] ss:$8 sps:$4 sm:$0xff]   ;;  %v3026_v5 = vld [vmem:[%s4467_s2 + $0x60] ss:$8 sps:$4 sm:$0xff]  }
   0x3   :  { %648 = vmatpush1.bf16.msra.mxu0 %v3020_v1  ;;  %688 = vmatprep.subr.bf16.mxu1 %v3021_v2  ;;  %v3027_v6 = vld [vmem:[%s4467_s2 + $0x164] ss:$8 sps:$4 sm:$0xff]   ;;  %v3029_v7 = vld [vmem:[%s4467_s2 + $0x160] ss:$8 sps:$4 sm:$0xff]   ;;  %v3030_v8 = vld [vmem:[%s4467_s2 + $0x54] ss:$8 sps:$4 sm:$0xff]  }
   0x4   :  { %689 = vmatpush1.bf16.msra.mxu1 %v3023_v3  ;;  %649 = vmatprep.subr.bf16.mxu0 %v3024_v4  ;;  %v3032_v9 = vld [vmem:[%s4467_s2 + $0x50] ss:$8 sps:$4 sm:$0xff]   ;;  %v3033_v10 = vld [vmem:[%s4467_s2 + $0x154] ss:$8 sps:$4 sm:$0xff]   ;;  %v3036_v11 = vld [vmem:[%s4467_s2 + $0x44] ss:$8 sps:$4 sm:$0xff]  }
   0x5   :  { %690 = vmatprep.subr.bf16.mxu1 %v3027_v6  ;;  %v3035_v12 = vld [vmem:[%s4467_s2 + $0x150] ss:$8 sps:$4 sm:$0xff]   ;;  %v3039_v13 = vld [vmem:[%s4467_s2 + $0x144] ss:$8 sps:$4 sm:$0xff]   ;;  %v3038_v14 = vld [vmem:[%s4467_s2 + $0x40] ss:$8 sps:$4 sm:$0xff]  }
   0x6   :  { %v3042_v15 = vld [vmem:[%s4467_s2 + $0x34] ss:$8 sps:$4 sm:$0xff]   ;;  %v3041_v16 = vld [vmem:[%s4467_s2 + $0x140] ss:$8 sps:$4 sm:$0xff]   ;;  %v3044_v18 = vld [vmem:[%s4467_s2 + $0x30] ss:$8 sps:$4 sm:$0xff]  }
   0x7   :  { %650 = vmatpush1.bf16.msra.mxu0 %v3026_v5  ;;  %v3045_v17 = vld [vmem:[%s4467_s2 + $0x134] ss:$8 sps:$4 sm:$0xff]   ;;  %v3048_v19 = vld [vmem:[%s4467_s2 + $0x24] ss:$8 sps:$4 sm:$0xff]   ;;  %v3047_v20 = vld [vmem:[%s4467_s2 + $0x130] ss:$8 sps:$4 sm:$0xff]  }
   0x8   :  { %651 = vmatprep.subr.bf16.mxu0 %v3030_v8  ;;  %691 = vmatpush1.bf16.msra.mxu1 %v3029_v7  ;;  %v3051_v21 = vld [vmem:[%s4467_s2 + $0x124] ss:$8 sps:$4 sm:$0xff]   ;;  %v3050_v22 = vld [vmem:[%s4467_s2 + $0x20] ss:$8 sps:$4 sm:$0xff]   ;;  %v3054_v23 = vld [vmem:[%s4467_s2 + $0x14] ss:$8 sps:$4 sm:$0xff]  }
   0x9   :  { %692 = vmatprep.subr.bf16.mxu1 %v3033_v10  ;;  %v3053_v24 = vld [vmem:[%s4467_s2 + $0x120] ss:$8 sps:$4 sm:$0xff]   ;;  %v3057_v25 = vld [vmem:[%s4467_s2 + $0x114] ss:$8 sps:$4 sm:$0xff]   ;;  %v3056_v26 = vld [vmem:[%s4467_s2 + $0x10] ss:$8 sps:$4 sm:$0xff]  }
   0xa   :  { %v3060_v27 = vld [vmem:[%s4467_s2 + $0x4] ss:$8 sps:$4 sm:$0xff]   ;;  %v3059_v28 = vld [vmem:[%s4467_s2 + $0x110] ss:$8 sps:$4 sm:$0xff]   ;;  %v3062_v30 = vld [vmem:[%s4467_s2] ss:$8 sps:$4 sm:$0xff]  }
   0xb   :  { %652 = vmatpush1.bf16.msra.mxu0 %v3032_v9  ;;  %v3063_v29 = vld [vmem:[%s4467_s2 + $0x104] ss:$8 sps:$4 sm:$0xff]   ;;  %v3066_v31 = vld [vmem:[%s4467_s2 + $0xf4] ss:$8 sps:$4 sm:$0xff]   ;;  %v3065_v32 = vld [vmem:[%s4467_s2 + $0x100] ss:$8 sps:$4 sm:$0xff]  }
   0xc   :  { %653 = vmatprep.subr.bf16.mxu0 %v3036_v11  ;;  %693 = vmatpush1.bf16.msra.mxu1 %v3035_v12  ;;  %v3069_v33 = vld [vmem:[%s4467_s2 + $0x1f4] ss:$8 sps:$4 sm:$0xff]   ;;  %v3068_v34 = vld [vmem:[%s4467_s2 + $0xf0] ss:$8 sps:$4 sm:$0xff]   ;;  %v3072_v35 = vld [vmem:[%s4467_s2 + $0xe4] ss:$8 sps:$4 sm:$0xff]  }
   0xd   :  { %694 = vmatprep.subr.bf16.mxu1 %v3039_v13  ;;  %v3071_v36 = vld [vmem:[%s4467_s2 + $0x1f0] ss:$8 sps:$4 sm:$0xff]   ;;  %v3075_v37 = vld [vmem:[%s4467_s2 + $0x1e4] ss:$8 sps:$4 sm:$0xff]   ;;  %v3074_v38 = vld [vmem:[%s4467_s2 + $0xe0] ss:$8 sps:$4 sm:$0xff]  }
   0xe   :  { %v3078_v39 = vld [vmem:[%s4467_s2 + $0xd4] ss:$8 sps:$4 sm:$0xff]   ;;  %v3077_v40 = vld [vmem:[%s4467_s2 + $0x1e0] ss:$8 sps:$4 sm:$0xff]   ;;  %v3080_v42 = vld [vmem:[%s4467_s2 + $0xd0] ss:$8 sps:$4 sm:$0xff]  }
   0xf   :  { %654 = vmatpush1.bf16.msra.mxu0 %v3038_v14  ;;  %v3081_v41 = vld [vmem:[%s4467_s2 + $0x1d4] ss:$8 sps:$4 sm:$0xff]   ;;  %v3084_v43 = vld [vmem:[%s4467_s2 + $0xc4] ss:$8 sps:$4 sm:$0xff]   ;;  %v3083_v44 = vld [vmem:[%s4467_s2 + $0x1d0] ss:$8 sps:$4 sm:$0xff]  }
  0x10   :  { %655 = vmatprep.subr.bf16.mxu0 %v3042_v15  ;;  %695 = vmatpush1.bf16.msra.mxu1 %v3041_v16  ;;  %v3087_v45 = vld [vmem:[%s4467_s2 + $0x1c4] ss:$8 sps:$4 sm:$0xff]   ;;  %v3086_v47 = vld [vmem:[%s4467_s2 + $0xc0] ss:$8 sps:$4 sm:$0xff]   ;;  %v3090_v49 = vld [vmem:[%s4467_s2 + $0xb4] ss:$8 sps:$4 sm:$0xff]  }
  0x11   :  { %696 = vmatprep.subr.bf16.mxu1 %v3045_v17  ;;  %v30_v46 = vld [vmem:[%s4465_s0 + $0x8] sm:$0xff]  ;;  %v32_v50 = vld [vmem:[%s4465_s0 + $0x18] sm:$0xff]  ;;  %v29_v4 = vld [vmem:[%s4465_s0] sm:$0xff] }
  0x12   :  { %v37_v48 = vpack.c.bf16 %v30_v46, %v30_v46  ;;  %v3089_v51 = vld [vmem:[%s4467_s2 + $0x1c0] ss:$8 sps:$4 sm:$0xff]   ;;  %v39_v52 = vpack.c.bf16 %v32_v50, %v32_v50  ;;  %v3093_v53 = vld [vmem:[%s4467_s2 + $0x1b4] ss:$8 sps:$4 sm:$0xff]   ;;  %v3092_v54 = vld [vmem:[%s4467_s2 + $0xb0] ss:$8 sps:$4 sm:$0xff]   ;;  %v36_v7 = vpack.c.bf16 %v29_v4, %v29_v4 }
  0x13   :  { %656 = vmatpush1.bf16.msra.mxu0 %v3044_v18  ;;  %v3096_v55 = vld [vmem:[%s4467_s2 + $0xa4] ss:$8 sps:$4 sm:$0xff]   ;;  %v3095_v56 = vld [vmem:[%s4467_s2 + $0x1b0] ss:$8 sps:$4 sm:$0xff]   ;;  %v3098_v58 = vld [vmem:[%s4467_s2 + $0xa0] ss:$8 sps:$4 sm:$0xff]  }
  0x14   :  { %657 = vmatprep.subr.bf16.mxu0 %v3048_v19  ;;  %697 = vmatpush1.bf16.msra.mxu1 %v3047_v20  ;;  %v3099_v57 = vld [vmem:[%s4467_s2 + $0x1a4] ss:$8 sps:$4 sm:$0xff]   ;;  %v3102_v59 = vld [vmem:[%s4467_s2 + $0x94] ss:$8 sps:$4 sm:$0xff]   ;;  %v3101_v60 = vld [vmem:[%s4467_s2 + $0x1a0] ss:$8 sps:$4 sm:$0xff]  }
  0x15   :  { %698 = vmatprep.subr.bf16.mxu1 %v3051_v21  ;;  %679 = vmatprep.mubr.bf16.mxu0 %v37_v48  ;;  %v3105_v61 = vld [vmem:[%s4467_s2 + $0x194] ss:$8 sps:$4 sm:$0xff]   ;;  %v3104_v62 = vld [vmem:[%s4467_s2 + $0x90] ss:$8 sps:$4 sm:$0xff]   ;;  %v3108_v63 = vld [vmem:[%s4467_s2 + $0x84] ss:$8 sps:$4 sm:$0xff]  }
  0x16   :  { %720 = vmatprep.mubr.bf16.mxu1 %v39_v52  ;;  %v3107_v0 = vld [vmem:[%s4467_s2 + $0x190] ss:$8 sps:$4 sm:$0xff]   ;;  %v3110_v1 = vld [vmem:[%s4467_s2 + $0x80] ss:$8 sps:$4 sm:$0xff]   ;;  %v3111_v2 = vld [vmem:[%s4467_s2 + $0x184] ss:$8 sps:$4 sm:$0xff]  }
  0x17   :  { %658 = vmatpush1.bf16.msra.mxu0 %v3050_v22  ;;  %v3113_v3 = vld [vmem:[%s4467_s2 + $0x180] ss:$8 sps:$4 sm:$0xff]   ;;  %v3116_v5 = vld [vmem:[%s4467_s2 + $0x274] ss:$8 sps:$4 sm:$0xff]   ;;  %v3114_v8 = vld [vmem:[%s4467_s2 + $0x270] ss:$8 sps:$4 sm:$0xff]  }
  0x18   :  { %659 = vmatprep.subr.bf16.mxu0 %v3054_v23  ;;  %699 = vmatpush1.bf16.msra.mxu1 %v3053_v24  ;;  %v31_v6 = vld [vmem:[%s4465_s0 + $0x10] sm:$0xff]  ;;  %v3119_v9 = vld [vmem:[%s4467_s2 + $0x264] ss:$8 sps:$4 sm:$0xff]   ;;  %v3159_v11 = vld [vmem:[%s4467_s2 + $0x300] ss:$8 sps:$4 sm:$0xff]   ;;  %v3480_v19 = vmov 0  }
  0x19   :  { %700 = vmatprep.subr.bf16.mxu1 %v3057_v25  ;;  %v38_v10 = vpack.c.bf16 %v31_v6, %v31_v6  ;;  %v3161_v12 = vld [vmem:[%s4467_s2 + $0x304] ss:$8 sps:$4 sm:$0xff]   ;;  %v3117_v13 = vld [vmem:[%s4467_s2 + $0x260] ss:$8 sps:$4 sm:$0xff]   ;;  %v3122_v14 = vld [vmem:[%s4467_s2 + $0x254] ss:$8 sps:$4 sm:$0xff]  }
  0x1a   :  { %v35_v15 = vld [vmem:[%s4465_s0 + $0x30] sm:$0xff]  ;;  %v34_v16 = vld [vmem:[%s4465_s0 + $0x28] sm:$0xff] }
  0x1b   :  { %660 = vmatpush1.bf16.msra.mxu0 %v3056_v26  ;;  %v41_v17 = vpack.c.bf16 %v34_v16, %v34_v16  ;;  %v3120_v18 = vld [vmem:[%s4467_s2 + $0x250] ss:$8 sps:$4 sm:$0xff]   ;;  %v3125_v20 = vld [vmem:[%s4467_s2 + $0x244] ss:$8 sps:$4 sm:$0xff]   ;;  %v42_v21 = vpack.c.bf16 %v35_v15, %v35_v15  ;;  %v3123_v22 = vld [vmem:[%s4467_s2 + $0x240] ss:$8 sps:$4 sm:$0xff]  }
  0x1c   :  { %661 = vmatprep.subr.bf16.mxu0 %v3060_v27  ;;  %701 = vmatpush1.bf16.msra.mxu1 %v3059_v28  ;;  %v3128_v23 = vld [vmem:[%s4467_s2 + $0x234] ss:$8 sps:$4 sm:$0xff]   ;;  %v3126_v24 = vld [vmem:[%s4467_s2 + $0x230] ss:$8 sps:$4 sm:$0xff]   ;;  %v3131_v25 = vld [vmem:[%s4467_s2 + $0x224] ss:$8 sps:$4 sm:$0xff]  }
  0x1d   :  { %702 = vmatprep.subr.bf16.mxu1 %v3063_v29  ;;  %v3129_v26 = vld [vmem:[%s4467_s2 + $0x220] ss:$8 sps:$4 sm:$0xff]   ;;  %v3134_v27 = vld [vmem:[%s4467_s2 + $0x214] ss:$8 sps:$4 sm:$0xff]   ;;  %v3132_v28 = vld [vmem:[%s4467_s2 + $0x210] ss:$8 sps:$4 sm:$0xff]  }
  0x1e   :  { %v3137_v29 = vld [vmem:[%s4467_s2 + $0x204] ss:$8 sps:$4 sm:$0xff]   ;;  %v3162_v46 = vld [vmem:[%s4467_s2 + $0x280] ss:$8 sps:$4 sm:$0xff]   ;;  %v3166_v50 = vld [vmem:[%s4469_s4 + $0x70] ss:$8 sps:$4 sm:$0xff]  }
  0x1f   :  { %662 = vmatpush1.bf16.msra.mxu0 %v3062_v30  ;;  %v3135_v30 = vld [vmem:[%s4467_s2 + $0x200] ss:$8 sps:$4 sm:$0xff]  }
  0x20   :  { %663 = vmatprep.subr.bf16.mxu0 %v3066_v31  ;;  %703 = vmatpush1.bf16.msra.mxu1 %v3065_v32  ;;  %v3140_v31 = vld [vmem:[%s4467_s2 + $0x2f4] ss:$8 sps:$4 sm:$0xff]   ;;  %v3138_v32 = vld [vmem:[%s4467_s2 + $0x2f0] ss:$8 sps:$4 sm:$0xff]   ;;  %v3168_v52 = vld [vmem:[%s4469_s4 + $0x60] ss:$8 sps:$4 sm:$0xff]  }
  0x21   :  { %704 = vmatprep.subr.bf16.mxu1 %v3069_v33  ;;  %v3143_v33 = vld [vmem:[%s4467_s2 + $0x2e4] ss:$8 sps:$4 sm:$0xff]  }
  0x23   :  { %664 = vmatpush2.bf16.msra.mxu0 %v3068_v34  ;;  %v3141_v34 = vld [vmem:[%s4467_s2 + $0x2e0] ss:$8 sps:$4 sm:$0xff]  }
  0x24   :  { %665 = vmatprep.subr.bf16.mxu0 %v3072_v35  ;;  %705 = vmatpush2.bf16.msra.mxu1 %v3071_v36  ;;  %v3146_v35 = vld [vmem:[%s4467_s2 + $0x2d4] ss:$8 sps:$4 sm:$0xff]   ;;  %v3144_v36 = vld [vmem:[%s4467_s2 + $0x2d0] ss:$8 sps:$4 sm:$0xff]  }
  0x25   :  { %706 = vmatprep.subr.bf16.mxu1 %v3075_v37  ;;  %v3149_v37 = vld [vmem:[%s4467_s2 + $0x2c4] ss:$8 sps:$4 sm:$0xff]  }
  0x27   :  { %666 = vmatpush2.bf16.msra.mxu0 %v3074_v38  ;;  %v3147_v38 = vld [vmem:[%s4467_s2 + $0x2c0] ss:$8 sps:$4 sm:$0xff]  }
  0x28   :  { %667 = vmatprep.subr.bf16.mxu0 %v3078_v39  ;;  %707 = vmatpush2.bf16.msra.mxu1 %v3077_v40  ;;  %v3152_v39 = vld [vmem:[%s4467_s2 + $0x2b4] ss:$8 sps:$4 sm:$0xff]   ;;  %v3150_v40 = vld [vmem:[%s4467_s2 + $0x2b0] ss:$8 sps:$4 sm:$0xff]  }
  0x29   :  { %708 = vmatprep.subr.bf16.mxu1 %v3081_v41  ;;  %v3155_v41 = vld [vmem:[%s4467_s2 + $0x2a4] ss:$8 sps:$4 sm:$0xff]  }
  0x2b   :  { %668 = vmatpush2.bf16.msra.mxu0 %v3080_v42  ;;  %v3153_v42 = vld [vmem:[%s4467_s2 + $0x2a0] ss:$8 sps:$4 sm:$0xff]  }
  0x2c   :  { %669 = vmatprep.subr.bf16.mxu0 %v3084_v43  ;;  %709 = vmatpush2.bf16.msra.mxu1 %v3083_v44  ;;  %v3158_v43 = vld [vmem:[%s4467_s2 + $0x294] ss:$8 sps:$4 sm:$0xff]   ;;  %v3156_v44 = vld [vmem:[%s4467_s2 + $0x290] ss:$8 sps:$4 sm:$0xff]  }
  0x2d   :  { %710 = vmatprep.subr.bf16.mxu1 %v3087_v45  ;;  %v3164_v45 = vld [vmem:[%s4467_s2 + $0x284] ss:$8 sps:$4 sm:$0xff]  }
  0x2f   :  { %670 = vmatpush2.bf16.msra.mxu0 %v3086_v47  ;;  %v33_v47 = vld [vmem:[%s4465_s0 + $0x20] sm:$0xff] }
  0x30   :  { %671 = vmatprep.subr.bf16.mxu0 %v3090_v49  ;;  %711 = vmatpush2.bf16.msra.mxu1 %v3089_v51  ;;  %v40_v48 = vpack.c.bf16 %v33_v47, %v33_v47  ;;  %v3165_v49 = vld [vmem:[%s4469_s4 + $0xf0] ss:$8 sps:$4 sm:$0xff]   ;;  %v3167_v51 = vld [vmem:[%s4469_s4 + $0xe0] ss:$8 sps:$4 sm:$0xff]  }
  0x31   :  { %712 = vmatprep.subr.bf16.mxu1 %v3093_v53  ;;  %v3169_v53 = vld [vmem:[%s4469_s4 + $0xd0] ss:$8 sps:$4 sm:$0xff]  }
  0x33   :  { %672 = vmatpush2.bf16.msra.mxu0 %v3092_v54  ;;  %v3170_v54 = vld [vmem:[%s4469_s4 + $0x50] ss:$8 sps:$4 sm:$0xff]  }
  0x34   :  { %673 = vmatprep.subr.bf16.mxu0 %v3096_v55  ;;  %713 = vmatpush2.bf16.msra.mxu1 %v3095_v56  ;;  %v3171_v55 = vld [vmem:[%s4469_s4 + $0xc0] ss:$8 sps:$4 sm:$0xff]  }
  0x35   :  { %714 = vmatprep.subr.bf16.mxu1 %v3099_v57 }
  0x37   :  { %674 = vmatpush2.bf16.msra.mxu0 %v3098_v58 }
  0x38   :  { %675 = vmatprep.subr.bf16.mxu0 %v3102_v59  ;;  %715 = vmatpush2.bf16.msra.mxu1 %v3101_v60 }
  0x39   :  { %716 = vmatprep.subr.bf16.mxu1 %v3105_v61 }
  0x3b   :  { %676 = vmatpush2.bf16.msra.mxu0 %v3104_v62 }
  0x3c   :  { %677 = vmatprep.subr.bf16.mxu0 %v3108_v63  ;;  %717 = vmatpush2.bf16.msra.mxu1 %v3107_v0 }
  0x3d   :  { %718 = vmatprep.subr.bf16.mxu1 %v3111_v2 }
  0x3f   :  { %678 = vmatpush2.bf16.msra.mxu0 %v3110_v1 }
  0x40   :  { %729 = vmatprep.subr.bf16.mxu0 %v3116_v5  ;;  %719 = vmatpush2.bf16.msra.mxu1 %v3113_v3 }
  0x41   :  { %784 = vmatprep.subr.bf16.mxu1 %v3161_v12 }
  0x42   :  { %680 = vmatmul.mubr.bf16.vlgmr.msra.gmra.mxu0 %v36_v7 }
  0x43   :  { %730 = vmatpush1.bf16.msra.mxu0 %v3114_v8  ;;  %721 = vmatmul.mubr.bf16.vlgmr.msra.gmra.mxu1 %v38_v10 }
  0x44   :  { %731 = vmatprep.subr.bf16.mxu0 %v3119_v9  ;;  %785 = vmatpush1.bf16.msra.mxu1 %v3159_v11 }
  0x45   :  { %802 = vmatprep.mubr.bf16.mxu1 %v3480_v19  ;;  %761 = vmatprep.mubr.bf16.mxu0 %v41_v17 }
  0x46   :  { %2874 = vmatprep.subr.bf16.mxu1 %v3165_v49 }
  0x47   :  { %732 = vmatpush1.bf16.msra.mxu0 %v3117_v13 }
  0x48   :  { %733 = vmatprep.subr.bf16.mxu0 %v3122_v14 }
  0x4b   :  { %734 = vmatpush1.bf16.msra.mxu0 %v3120_v18  ;;  %2693 = vmatmul.mubr.msk.bf16.vlgmr.msra.gmra.mxu1 %vm643_vm0, %v42_v21 }
  0x4c   :  { %735 = vmatprep.subr.bf16.mxu0 %v3125_v20  ;;  %2875 = vmatpush3.bf16.msra.mxu1 %v3166_v50 }
  0x4d   :  { %2876 = vmatprep.subr.bf16.mxu1 %v3167_v51 }
  0x4f   :  { %736 = vmatpush1.bf16.msra.mxu0 %v3123_v22 }
  0x50   :  { %737 = vmatprep.subr.bf16.mxu0 %v3128_v23  ;;  %2877 = vmatpush3.bf16.msra.mxu1 %v3168_v52 }
  0x51   :  { %2878 = vmatprep.subr.bf16.mxu1 %v3169_v53 }
  0x53   :  { %738 = vmatpush1.bf16.msra.mxu0 %v3126_v24 }
  0x54   :  { %739 = vmatprep.subr.bf16.mxu0 %v3131_v25 }
  0x57   :  { %740 = vmatpush1.bf16.msra.mxu0 %v3129_v26 }
  0x58   :  { %741 = vmatprep.subr.bf16.mxu0 %v3134_v27 }
  0x5b   :  { %742 = vmatpush1.bf16.msra.mxu0 %v3132_v28 }
  0x5c   :  { %743 = vmatprep.subr.bf16.mxu0 %v3137_v29 }
  0x5f   :  { %744 = vmatpush1.bf16.msra.mxu0 %v3135_v30 }
  0x60   :  { %745 = vmatprep.subr.bf16.mxu0 %v3140_v31 }
  0x63   :  { %746 = vmatpush2.bf16.msra.mxu0 %v3138_v32 }
  0x64   :  { %747 = vmatprep.subr.bf16.mxu0 %v3143_v33 }
  0x67   :  { %748 = vmatpush2.bf16.msra.mxu0 %v3141_v34 }
  0x68   :  { %749 = vmatprep.subr.bf16.mxu0 %v3146_v35 }
  0x6b   :  { %750 = vmatpush2.bf16.msra.mxu0 %v3144_v36 }
  0x6c   :  { %751 = vmatprep.subr.bf16.mxu0 %v3149_v37 }
  0x6f   :  { %752 = vmatpush2.bf16.msra.mxu0 %v3147_v38 }
  0x70   :  { %753 = vmatprep.subr.bf16.mxu0 %v3152_v39 }
  0x73   :  { %754 = vmatpush2.bf16.msra.mxu0 %v3150_v40 }
  0x74   :  { %755 = vmatprep.subr.bf16.mxu0 %v3155_v41 }
  0x77   :  { %756 = vmatpush2.bf16.msra.mxu0 %v3153_v42 }
  0x78   :  { %757 = vmatprep.subr.bf16.mxu0 %v3158_v43 }
  0x7b   :  { %758 = vmatpush2.bf16.msra.mxu0 %v3156_v44 }
  0x7c   :  { %759 = vmatprep.subr.bf16.mxu0 %v3164_v45 }
  0x7f   :  { %760 = vmatpush2.bf16.msra.mxu0 %v3162_v46 }
  0x82   :  { %762 = vmatmul.mubr.bf16.vlgmr.msra.gmra.mxu0 %v40_v48 }
  0x83   :  { %15 = vsyncpa [#allocation5], 0  ;;  %2879 = vmatpush3.bf16.msra.mxu1 %v3170_v54  ;;  %v3172_v56 = vld [vmem:[%s4469_s4 + $0x40] ss:$8 sps:$4 sm:$0xff]   ;;  %v3173_v57 = vld [vmem:[%s4469_s4 + $0xb0] ss:$8 sps:$4 sm:$0xff]   ;;  %v143_v14 = vlaneseq }
  0x84   :  { %2880 = vmatprep.subr.bf16.mxu1 %v3171_v55  ;;  %v3174_v58 = vld [vmem:[%s4469_s4 + $0x30] ss:$8 sps:$4 sm:$0xff]   ;;  %v3175_v59 = vld [vmem:[%s4469_s4 + $0xa0] ss:$8 sps:$4 sm:$0xff]   ;;  %v3481_v1 = vmov 0.0   ;;  %vm3482_vm1 = vmmov 0  }
  0x85   :  { %v3176_v60 = vld [vmem:[%s4469_s4 + $0x20] ss:$8 sps:$4 sm:$0xff]   ;;  %v3177_v61 = vld [vmem:[%s4469_s4 + $0x90] ss:$8 sps:$4 sm:$0xff]   ;;  %2965 = vmatprep.subr.bf16.mxu0 %v3481_v1  ;;  %v3899_v15 = vshrl.u32 %v143_v14, 7  ;;  %2973 = vmatprep.mubr.msk.bf16.mxu0 %vm3482_vm1, %v3481_v1  ;;  %vm1126_vm2 = vcmask 523264  }
  0x86   :  { %v3178_v62 = vld [vmem:[%s4469_s4 + $0x10] ss:$8 sps:$4 sm:$0xff]   ;;  %v3179_v63 = vld [vmem:[%s4469_s4 + $0x80] ss:$8 sps:$4 sm:$0xff]   ;;  %vm1189_vm3 = vcmask 261120   ;;  %s3483_s17 = smov 112  }
  0x87   :  { %2881 = vmatpush3.bf16.msra.mxu1 %v3172_v56  ;;  %v3180_v0 = vld [vmem:[%s4469_s4] ss:$8 sps:$4 sm:$0xff]   ;;  %v3902_v16 = vsub.s32 0, %v3899_v15  ;;  %v3908_v18 = vsub.s32 1, %v3899_v15  ;;  %v3181_v37 = vld [vmem:[%s4469_s4 + $0x170] ss:$8 sps:$4 sm:$0xff]  }
  0x88   :  { %2882 = vmatprep.subr.bf16.mxu1 %v3173_v57  ;;  %v141_v17 = vld [vmem:[%s4470_s5] ss:$8 sm:$0x3]  ;;  %v3183_v40 = vld [vmem:[%s4469_s4 + $0x150] ss:$8 sps:$4 sm:$0xff]   ;;  %s3484_s12 = smov [#allocation4]  }
  0x89   :  { %v146_v20 = vrot.slane %v141_v17, %v3902_v16  ;;  %v150_v21 = vrot.slane %v141_v17, %v3908_v18  ;;  %v3182_v39 = vld [vmem:[%s4469_s4 + $0x160] ss:$8 sps:$4 sm:$0xff]   ;;  %v3185_v42 = vld [vmem:[%s4469_s4 + $0x130] ss:$8 sps:$4 sm:$0xff]   ;;  %v1176_v17 = vld [vmem:[%s4470_s5 + $0x4] ss:$0 sm:$0xff] }
  0x8a   :  { %v3184_v41 = vld [vmem:[%s4469_s4 + $0x140] ss:$8 sps:$4 sm:$0xff]   ;;  %v3187_v44 = vld [vmem:[%s4469_s4 + $0x110] ss:$8 sps:$4 sm:$0xff]   ;;  %s2570_s13 = sshll.u32 %s3484_s12, 4  ;;  %s2571_s13 = int_to_ptr.vmem [resolvable:$true] %s2570_s13 }
  0x8b   :  { %2883 = vmatpush3.bf16.msra.mxu1 %v3174_v58  ;;  %v3186_v43 = vld [vmem:[%s4469_s4 + $0x120] ss:$8 sps:$4 sm:$0xff]   ;;  %v3189_v46 = vld [vmem:[%s4469_s4 + $0x1b0] ss:$8 sps:$4 sm:$0xff]   ;;  %s3416_s14 = scalar_lea.vmem %s2571_s13, 128  ;;  %p3421_p1 = scmp.lt.s32.totalorder %s2571_s13, %s2571_s13 }
  0x8c   :  { %2884 = vmatprep.subr.bf16.mxu1 %v3175_v59  ;;  %v3188_v45 = vld [vmem:[%s4469_s4 + $0x100] ss:$8 sps:$4 sm:$0xff]   ;;  %2966 = vmatpush3.bf16.msra.mxu0 %v3189_v46  ;;  %v3191_v57 = vld [vmem:[%s4469_s4 + $0x190] ss:$8 sps:$4 sm:$0xff]   ;;  %p3417_p0 = scmp.ne.s32.totalorder %s2571_s13, %s3416_s14  ;;  %p3422_p2 = scmp.lt.s32.totalorder %s3416_s14, %s3416_s14 }
  0x8d   :  { %v3190_v47 = vld [vmem:[%s4469_s4 + $0x1a0] ss:$8 sps:$4 sm:$0xff]   ;;  %2967 = vmatprep.subr.bf16.mxu0 %v3481_v1  ;;  %v3193_v59 = vld [vmem:[%s4469_s4 + $0x1d0] ss:$8 sps:$4 sm:$0xff]  }
  0x8e   :  { %v847_v49 = vld [vmem:[%s4470_s5 + $0x1] ss:$0 sm:$0xff]  ;;  %p3423_p3 = por %p3422_p2, %p3421_p1 }
  0x8f   :  { %2885 = vmatpush3.bf16.msra.mxu1 %v3176_v60  ;;  %v3192_v58 = vld [vmem:[%s4469_s4 + $0x180] ss:$8 sps:$4 sm:$0xff]  }
  0x90   :  { %2886 = vmatprep.subr.bf16.mxu1 %v3177_v61  ;;  %2968 = vmatpush3.bf16.msra.mxu0 %v3190_v47  ;;  %v1002_v60 = vld [vmem:[%s4470_s5 + $0x2] ss:$0 sm:$0xff]  ;;  %v3201_v47 = vld [vmem:[%s4469_s4 + $0x210] ss:$8 sps:$4 sm:$0xff]   ;;  %p3424_p4 = pnand %p3423_p3, %p3417_p0 }
  0x91   :  { %2969 = vmatprep.subr.bf16.mxu0 %v3481_v1  ;;  %v3195_v14 = vld [vmem:[%s4469_s4 + $0x1e0] ss:$8 sps:$4 sm:$0xff]  }
  0x92   :  { %v3200_v46 = vld [vmem:[%s4469_s4 + $0x220] ss:$8 sps:$4 sm:$0xff]  }
  0x93   :  { %2887 = vmatpush3.bf16.msra.mxu1 %v3178_v62 }
  0x94   :  { %2888 = vmatprep.subr.bf16.mxu1 %v3179_v63  ;;  %2970 = vmatpush3.bf16.msra.mxu0 %v3191_v57  ;;  %v3217_v57 = vld [vmem:[%s4469_s4 + $0x270] ss:$8 sps:$4 sm:$0xff]  }
  0x95   :  { %2971 = vmatprep.subr.bf16.mxu0 %v3481_v1 }
  0x97   :  { %2889 = vmatpush3.bf16.msra.mxu1 %v3180_v0 }
  0x98   :  { %2945 = vmatprep.subr.bf16.mxu1 %v3481_v1  ;;  %2972 = vmatpush3.bf16.msra.mxu0 %v3192_v58  ;;  %v3222_v58 = vld [vmem:[%s4469_s4 + $0x264] ss:$8 sps:$4 sm:$0xff]  }
  0x99   :  { %2999 = vmatprep.subr.bf16.mxu0 %v3481_v1 }
 0x102   :  { %v681_v2 = vpop.f32.mrf.mxu0 }
 0x103   :  { %v722_v4 = vpop.f32.mrf.mxu1  ;;  %v682_v22 = vadd.f32 %v681_v2, %v146_v20 }
 0x104   :  { %v683_v3 = vpop.f32.mrf.mxu0 }
 0x105   :  { %v724_v6 = vpop.f32.mrf.mxu1  ;;  %v684_v23 = vadd.f32 %v683_v3, %v150_v21  ;;  %v723_v24 = vadd.f32 %v722_v4, %v682_v22 }
 0x106   :  { %v685_v5 = vpop.f32.mrf.mxu0 }
 0x107   :  { %v726_v8 = vpop.f32.mrf.mxu1  ;;  %v725_v26 = vadd.f32 %v724_v6, %v684_v23  ;;  %v3194_v5 = vld [vmem:[%s4469_s4 + $0x1c0] ss:$8 sps:$4 sm:$0xff]  }
 0x108   :  { %v686_v7 = vpop.f32.mrf.mxu0  ;;  %v1101_v6 = vld [vmem:[%s4470_s5 + $0x3] ss:$0 sm:$0xff] }
 0x109   :  { %v727_v9 = vpop.f32.mrf.mxu1 }
 0x10b   :  { %v804_v10 = vpop.f32.mrf.mxu1 }
 0x10d   :  { %v806_v11 = vpop.f32.mrf.mxu1 }
 0x10f   :  { %v808_v12 = vpop.f32.mrf.mxu1 }
 0x111   :  { %v809_v13 = vpop.f32.mrf.mxu1 }
 0x142   :  { %v763_v25 = vpop.f32.mrf.mxu0 }
 0x143   :  { %v764_v27 = vadd.f32 %v763_v25, %v723_v24 }
 0x144   :  { %v765_v28 = vpop.f32.mrf.mxu0 }
 0x145   :  { %v805_v29 = vadd.f32 %v804_v10, %v764_v27  ;;  %v766_v30 = vadd.f32 %v765_v28, %v725_v26  ;;  %v1233_v28 = vld [vmem:[%s4466_s1] sm:$0xff] }
 0x146   :  { %v767_v31 = vpop.f32.mrf.mxu0 }
 0x147   :  { %v807_v32 = vadd.f32 %v806_v11, %v766_v30  ;;  %v811_v33 = vmax.f32 %v805_v29, 0.0 }
 0x148   :  { %v768_v34 = vpop.f32.mrf.mxu0 }
 0x149   :  { %v812_v35 = vmax.f32 %v807_v32, 0.0  ;;  %v845_v38 = vpack.c.bf16 %v811_v33, %v811_v33  ;;  %v3196_v33 = vld [vmem:[%s4469_s4 + $0x200] ss:$8 sps:$4 sm:$0xff]  }
 0x14b   :  { %v846_v36 = vpack.c.bf16 %v812_v35, %v812_v35  ;;  %v3197_v35 = vld [vmem:[%s4469_s4 + $0x1f0] ss:$8 sps:$4 sm:$0xff]  }
 0x14d   :  { %976 = vmatprep.mubr.bf16.mxu1 %v846_v36  ;;  %v3198_v36 = vld [vmem:[%s4469_s4 + $0x240] ss:$8 sps:$4 sm:$0xff]  }
 0x14e   :  { %977 = vmatmul.mubr.bf16.vlgmr.msra.gmra.mxu1 %v845_v38  ;;  %v1246_v38 = vld [vmem:[%s4470_s5 + $0x5] ss:$0 sm:$0xff] }
 0x14f   :  { %2946 = vmatpush3.bf16.msra.mxu1 %v3181_v37  ;;  %2961 = vmatprep.mubr.msk.bf16.mxu1 %vm3482_vm1, %v3481_v1  ;;  %v3199_v37 = vld [vmem:[%s4469_s4 + $0x230] ss:$8 sps:$4 sm:$0xff]  }
 0x150   :  { %2947 = vmatprep.subr.bf16.mxu1 %v3481_v1 }
 0x153   :  { %2948 = vmatpush3.bf16.msra.mxu1 %v3182_v39 }
 0x154   :  { %2949 = vmatprep.subr.bf16.mxu1 %v3481_v1 }
 0x157   :  { %2950 = vmatpush3.bf16.msra.mxu1 %v3183_v40 }
 0x158   :  { %2951 = vmatprep.subr.bf16.mxu1 %v3481_v1 }
 0x15b   :  { %2952 = vmatpush3.bf16.msra.mxu1 %v3184_v41 }
 0x15c   :  { %2953 = vmatprep.subr.bf16.mxu1 %v3481_v1 }
 0x15f   :  { %2954 = vmatpush3.bf16.msra.mxu1 %v3185_v42 }
 0x160   :  { %2955 = vmatprep.subr.bf16.mxu1 %v3481_v1 }
 0x163   :  { %2956 = vmatpush3.bf16.msra.mxu1 %v3186_v43 }
 0x164   :  { %2957 = vmatprep.subr.bf16.mxu1 %v3481_v1 }
 0x167   :  { %2958 = vmatpush3.bf16.msra.mxu1 %v3187_v44 }
 0x168   :  { %2959 = vmatprep.subr.bf16.mxu1 %v3481_v1 }
 0x16b   :  { %2960 = vmatpush3.bf16.msra.mxu1 %v3188_v45 }
 0x16c   :  { %2977 = vmatprep.subr.bf16.mxu1 %v3481_v1 }
 0x20e   :  { %v2890_v48 = vpop.f32.mrf.mxu1 }
 0x210   :  { %v2891_v50 = vpop.f32.mrf.mxu1 }
 0x211   :  { %v2892_v51 = vadd.f32 %v2891_v50, %v2890_v48  ;;  %v3202_v48 = vld [vmem:[%s4469_s4 + $0x2c0] ss:$8 sps:$4 sm:$0xff]   ;;  %v3210_v50 = vld [vmem:[%s4469_s4 + $0x2a4] ss:$8 sps:$4 sm:$0xff]  }
 0x212   :  { %v2893_v52 = vpop.f32.mrf.mxu1 }
 0x213   :  { %v979_v53 = vadd.f32 %v2892_v51, %v847_v49  ;;  %v3207_v49 = vld [vmem:[%s4469_s4 + $0x2b4] ss:$8 sps:$4 sm:$0xff]   ;;  %v3208_v51 = vld [vmem:[%s4469_s4 + $0x2a0] ss:$8 sps:$4 sm:$0xff]  }
 0x214   :  { %v2894_v54 = vpop.f32.mrf.mxu1  ;;  %v3213_v52 = vld [vmem:[%s4469_s4 + $0x294] ss:$8 sps:$4 sm:$0xff]  }
 0x215   :  { %v984_v55 = vmax.f32 %v979_v53, 0.0  ;;  %v3211_v53 = vld [vmem:[%s4469_s4 + $0x290] ss:$8 sps:$4 sm:$0xff]   ;;  %v3216_v54 = vld [vmem:[%s4469_s4 + $0x284] ss:$8 sps:$4 sm:$0xff]  }
 0x217   :  { %v1001_v56 = vpack.c.bf16 %v984_v55, %v984_v55  ;;  %v3214_v55 = vld [vmem:[%s4469_s4 + $0x280] ss:$8 sps:$4 sm:$0xff]  }
 0x219   :  { %2962 = vmatmul.mubr.bf16.vlgmr.msra.gmra.mxu1 %v1001_v56  ;;  %v3219_v56 = vld [vmem:[%s4469_s4 + $0x274] ss:$8 sps:$4 sm:$0xff]  }
 0x21a   :  { %2981 = vmatprep.mubr.msk.bf16.mxu1 %vm3482_vm1, %v3481_v1  ;;  %2978 = vmatpush3.bf16.msra.mxu1 %v3193_v59  ;;  %v3220_v59 = vld [vmem:[%s4469_s4 + $0x260] ss:$8 sps:$4 sm:$0xff]  }
 0x21b   :  { %2979 = vmatprep.subr.bf16.mxu1 %v3481_v1 }
 0x21e   :  { %2980 = vmatpush3.bf16.msra.mxu1 %v3194_v5  ;;  %v3225_v5 = vld [vmem:[%s4469_s4 + $0x254] ss:$8 sps:$4 sm:$0xff]  }
 0x21f   :  { %2985 = vmatprep.subr.bf16.mxu1 %v3481_v1 }
 0x2d9   :  { %v1085_v61 = vpop.f32.mrf.mxu1 }
 0x2da   :  { %v1086_v62 = vadd.f32 %v1085_v61, %v1002_v60  ;;  %v1302_v60 = vld [vmem:[%s4470_s5 + $0x6] ss:$0 sm:$0xff] }
 0x2db   :  { %v2963_v63 = vpop.f32.mrf.mxu1 }
 0x2dc   :  { %v1091_v0 = vmax.f32 %v1086_v62, 0.0 }
 0x2dd   :  { %v1088_v2 = vpop.f32.mrf.mxu1 }
 0x2de   :  { %v1100_v3 = vpack.c.bf16 %v1091_v0, %v1091_v0 }
 0x2df   :  { %v2964_v4 = vpop.f32.mrf.mxu1 }
 0x2e0   :  { %2974 = vmatmul.mubr.msk.bf16.vlgmr.msra.gmra.mxu0 %vm1126_vm2, %v1100_v3 }
 0x2e1   :  { %3007 = vmatprep.mubr.msk.bf16.mxu0 %vm3482_vm1, %v3481_v1  ;;  %3000 = vmatpush3.bf16.msra.mxu0 %v3198_v36  ;;  %v3300_v36 = vld [vmem:[%s4468_s3 + $0x26c] ss:$28 sps:$4 sm:$0xff]  }
 0x2e2   :  { %3001 = vmatprep.subr.bf16.mxu0 %v3481_v1 }
 0x2e5   :  { %3002 = vmatpush3.bf16.msra.mxu0 %v3199_v37  ;;  %v3298_v37 = vld [vmem:[%s4468_s3 + $0x268] ss:$28 sps:$4 sm:$0xff]  }
 0x2e6   :  { %3003 = vmatprep.subr.bf16.mxu0 %v3481_v1 }
 0x2e9   :  { %3004 = vmatpush3.bf16.msra.mxu0 %v3200_v46  ;;  %v3229_v46 = vld [vmem:[%s4468_s3 + $0x190] ss:$28 sps:$4 sm:$0xff]  }
 0x2ea   :  { %3005 = vmatprep.subr.bf16.mxu0 %v3481_v1 }
 0x2ed   :  { %3006 = vmatpush3.bf16.msra.mxu0 %v3201_v47 }
 0x3a0   :  { %v1164_v7 = vpop.f32.mrf.mxu0 }
 0x3a1   :  { %v1165_v8 = vadd.f32 %v1164_v7, %v1101_v6  ;;  %v3223_v6 = vld [vmem:[%s4469_s4 + $0x250] ss:$8 sps:$4 sm:$0xff]   ;;  %v3226_v7 = vld [vmem:[%s4468_s3 + $0x188] ss:$28 sps:$4 sm:$0xff]  }
 0x3a2   :  { %v2975_v9 = vpop.f32.mrf.mxu0 }
 0x3a3   :  { %v1170_v10 = vmax.f32 %v1165_v8, 0.0  ;;  %v3228_v8 = vld [vmem:[%s4468_s3 + $0x18c] ss:$28 sps:$4 sm:$0xff]   ;;  %v3231_v9 = vld [vmem:[%s4468_s3 + $0x194] ss:$28 sps:$4 sm:$0xff]  }
 0x3a4   :  { %v1167_v11 = vpop.f32.mrf.mxu0  ;;  %2336 = vmatprep.subr.bf16.mxu0 %v3228_v8  ;;  %v3309_v8 = vld [vmem:[%s4468_s3 + $0x23c] ss:$28 sps:$4 sm:$0xff]  }
 0x3a5   :  { %v1175_v12 = vpack.c.bf16 %v1170_v10, %v1170_v10  ;;  %v3234_v10 = vld [vmem:[%s4468_s3 + $0x154] ss:$28 sps:$4 sm:$0xff]  }
 0x3a6   :  { %v2976_v13 = vpop.f32.mrf.mxu0  ;;  %v3232_v11 = vld [vmem:[%s4468_s3 + $0x150] ss:$28 sps:$4 sm:$0xff]  }
 0x3a7   :  { %2982 = vmatmul.mubr.msk.bf16.vlgmr.msra.gmra.mxu1 %vm1189_vm3, %v1175_v12  ;;  %v3240_v12 = vld [vmem:[%s4468_s3 + $0x11c] ss:$28 sps:$4 sm:$0xff]  }
 0x3a8   :  { %2987 = vmatprep.mubr.msk.bf16.mxu1 %vm3482_vm1, %v3481_v1  ;;  %2986 = vmatpush3.bf16.msra.mxu1 %v3195_v14  ;;  %v3238_v13 = vld [vmem:[%s4468_s3 + $0x118] ss:$28 sps:$4 sm:$0xff]   ;;  %v3246_v14 = vld [vmem:[%s4468_s3 + $0xe4] ss:$28 sps:$4 sm:$0xff]  }
 0x3a9   :  { %2991 = vmatprep.subr.bf16.mxu1 %v3481_v1 }
 0x467   :  { %v1227_v20 = vpop.f32.mrf.mxu1 }
 0x468   :  { %v1228_v21 = vadd.f32 %v1227_v20, %v1176_v17  ;;  %v3244_v17 = vld [vmem:[%s4468_s3 + $0xe0] ss:$28 sps:$4 sm:$0xff]   ;;  %v3252_v20 = vld [vmem:[%s4468_s3 + $0xac] ss:$28 sps:$4 sm:$0xff]  }
 0x469   :  { %v2983_v22 = vpop.f32.mrf.mxu1 }
 0x46a   :  { %v1234_v23 = vmul.f32 0.5, %v1228_v21  ;;  %2548 = vst.msk [vmem:[#allocation4] sm:$0xff] %vm643_vm0, %v1228_v21  ;;  %v3258_v22 = vld [vmem:[%s4468_s3 + $0x74] ss:$28 sps:$4 sm:$0xff]  }
 0x46b   :  { %v1230_v24 = vpop.f32.mrf.mxu1 }
 0x46c   :  { %v1235_v25 = vmul.f32 1.442695, %v1234_v23  ;;  %v3256_v23 = vld [vmem:[%s4468_s3 + $0x70] ss:$28 sps:$4 sm:$0xff]   ;;  %v3264_v24 = vld [vmem:[%s4468_s3 + $0x3c] ss:$28 sps:$4 sm:$0xff]  }
 0x46d   :  { %v2984_v26 = vpop.f32.mrf.mxu1 }
 0x46e   :  { %3386 = vpow2.f32 %v1235_v25  ;;  %v3262_v25 = vld [vmem:[%s4468_s3 + $0x38] ss:$28 sps:$4 sm:$0xff]   ;;  %v3270_v26 = vld [vmem:[%s4468_s3 + $0x4] ss:$28 sps:$4 sm:$0xff]  }
 0x47b   :  { %v3387_v27 = vpop.eup %3386 }
 0x47c   :  { %1238 = vrot.lane.b32.xlu0 %v3387_v27, %s3483_s17  ;;  %v3268_v27 = vld [vmem:[%s4468_s3] ss:$28 sps:$4 sm:$0xff]  }
 0x480   :  { %2550 = vrot.lane.b32.xlu0 %v1228_v21, %s3483_s17 }
 0x4ee   :  { %v1239_v29 = vpop.permute.xlu0 %1238 }
 0x4ef   :  { %v1241_v30 = vmul.f32 %v1239_v29, %v1233_v28  ;;  %v3276_v28 = vld [vmem:[%s4468_s3 + $0x34c] ss:$28 sps:$4 sm:$0xff]  }
 0x4f0   :  { %v3274_v29 = vld [vmem:[%s4468_s3 + $0x348] ss:$28 sps:$4 sm:$0xff]  }
 0x4f1   :  { %v1242_v31 = vadd.f32 %v1241_v30, %v1228_v21  ;;  %v3250_v21 = vld [vmem:[%s4468_s3 + $0xa8] ss:$28 sps:$4 sm:$0xff]   ;;  %v3282_v30 = vld [vmem:[%s4468_s3 + $0x314] ss:$28 sps:$4 sm:$0xff]  }
 0x4f2   :  { %v2551_v32 = vpop.permute.xlu0 %2550 }
 0x4f3   :  { %v1245_v34 = vpack.c.bf16 %v1242_v31, %v1242_v31  ;;  %2553 = vst.msk [vmem:[#allocation6] sm:$0xff] %vm643_vm0, %v2551_v32  ;;  %v3280_v31 = vld [vmem:[%s4468_s3 + $0x310] ss:$28 sps:$4 sm:$0xff]   ;;  %v3288_v32 = vld [vmem:[%s4468_s3 + $0x2dc] ss:$28 sps:$4 sm:$0xff]  }
 0x4f5   :  { %2988 = vmatmul.mubr.msk.bf16.vlgmr.msra.gmra.mxu1 %vm643_vm0, %v1245_v34  ;;  %v3294_v34 = vld [vmem:[%s4468_s3 + $0x2a4] ss:$28 sps:$4 sm:$0xff]  }
 0x4f6   :  { %2992 = vmatpush3.bf16.msra.mxu1 %v3196_v33  ;;  %2995 = vmatprep.mubr.msk.bf16.mxu1 %vm3482_vm1, %v3481_v1  ;;  %v3286_v33 = vld [vmem:[%s4468_s3 + $0x2d8] ss:$28 sps:$4 sm:$0xff]  }
 0x4f7   :  { %2993 = vmatprep.subr.bf16.mxu1 %v3481_v1  ;;  %v3205_v1 = vld [vmem:[%s4469_s4 + $0x2b0] ss:$8 sps:$4 sm:$0xff]  }
 0x4fa   :  { %2994 = vmatpush3.bf16.msra.mxu1 %v3197_v35  ;;  %v3292_v35 = vld [vmem:[%s4468_s3 + $0x2a0] ss:$28 sps:$4 sm:$0xff]  }
 0x5b5   :  { %v1290_v39 = vpop.f32.mrf.mxu1 }
 0x5b6   :  { %v1291_v40 = vadd.f32 %v1290_v39, %v1246_v38  ;;  %v3306_v38 = vld [vmem:[%s4468_s3 + $0x234] ss:$28 sps:$4 sm:$0xff]  }
 0x5b7   :  { %v2989_v41 = vpop.f32.mrf.mxu1  ;;  %v3304_v39 = vld [vmem:[%s4468_s3 + $0x230] ss:$28 sps:$4 sm:$0xff]  }
 0x5b8   :  { %v1296_v42 = vmax.f32 %v1291_v40, 0.0  ;;  %v1368_v40 = vld [vmem:[%s4470_s5 + $0x7] ss:$0 sm:$0xff] }
 0x5b9   :  { %v1293_v43 = vpop.f32.mrf.mxu1 }
 0x5ba   :  { %v1301_v44 = vpack.c.bf16 %v1296_v42, %v1296_v42 }
 0x5bb   :  { %v2990_v45 = vpop.f32.mrf.mxu1 }
 0x5bc   :  { %2996 = vmatmul.mubr.msk.bf16.vlgmr.msra.gmra.mxu1 %vm1189_vm3, %v1301_v44 }
 0x5bd   :  { %1579 = vmatprep.mubr.bf16.mxu1 %v3480_v19  ;;  %v3204_v19 = vld [vmem:[%s4469_s4 + $0x2c4] ss:$8 sps:$4 sm:$0xff]  }
 0x5be   :  { %1547 = vmatprep.subr.bf16.mxu1 %v3204_v19 }
 0x5bf   :  { %1548 = vmatpush1.bf16.msra.mxu1 %v3202_v48  ;;  %v3237_v48 = vld [vmem:[%s4468_s3 + $0x15c] ss:$28 sps:$4 sm:$0xff]  }
 0x5c0   :  { %1549 = vmatprep.subr.bf16.mxu1 %v3207_v49  ;;  %v3235_v49 = vld [vmem:[%s4468_s3 + $0x158] ss:$28 sps:$4 sm:$0xff]  }
 0x5c3   :  { %1550 = vmatpush1.bf16.msra.mxu1 %v3205_v1  ;;  %v3243_v1 = vld [vmem:[%s4468_s3 + $0x124] ss:$28 sps:$4 sm:$0xff]  }
 0x5c4   :  { %1551 = vmatprep.subr.bf16.mxu1 %v3210_v50  ;;  %v3241_v50 = vld [vmem:[%s4468_s3 + $0x120] ss:$28 sps:$4 sm:$0xff]  }
 0x5c7   :  { %1552 = vmatpush1.bf16.msra.mxu1 %v3208_v51  ;;  %v3249_v51 = vld [vmem:[%s4468_s3 + $0xec] ss:$28 sps:$4 sm:$0xff]  }
 0x5c8   :  { %1553 = vmatprep.subr.bf16.mxu1 %v3213_v52  ;;  %v3247_v52 = vld [vmem:[%s4468_s3 + $0xe8] ss:$28 sps:$4 sm:$0xff]  }
 0x5cb   :  { %1554 = vmatpush1.bf16.msra.mxu1 %v3211_v53  ;;  %v3255_v53 = vld [vmem:[%s4468_s3 + $0xb4] ss:$28 sps:$4 sm:$0xff]  }
 0x5cc   :  { %1555 = vmatprep.subr.bf16.mxu1 %v3216_v54  ;;  %v3253_v54 = vld [vmem:[%s4468_s3 + $0xb0] ss:$28 sps:$4 sm:$0xff]  }
 0x5cf   :  { %1556 = vmatpush1.bf16.msra.mxu1 %v3214_v55  ;;  %v3261_v55 = vld [vmem:[%s4468_s3 + $0x7c] ss:$28 sps:$4 sm:$0xff]  }
 0x5d0   :  { %1557 = vmatprep.subr.bf16.mxu1 %v3219_v56  ;;  %v3259_v56 = vld [vmem:[%s4468_s3 + $0x78] ss:$28 sps:$4 sm:$0xff]  }
 0x5d3   :  { %1558 = vmatpush1.bf16.msra.mxu1 %v3217_v57  ;;  %v3267_v57 = vld [vmem:[%s4468_s3 + $0x44] ss:$28 sps:$4 sm:$0xff]  }
 0x5d4   :  { %1559 = vmatprep.subr.bf16.mxu1 %v3222_v58  ;;  %v3265_v58 = vld [vmem:[%s4468_s3 + $0x40] ss:$28 sps:$4 sm:$0xff]  }
 0x5d7   :  { %1560 = vmatpush1.bf16.msra.mxu1 %v3220_v59  ;;  %v3273_v59 = vld [vmem:[%s4468_s3 + $0xc] ss:$28 sps:$4 sm:$0xff]  }
 0x5d8   :  { %1561 = vmatprep.subr.bf16.mxu1 %v3225_v5  ;;  %v3295_v5 = vld [vmem:[%s4468_s3 + $0x2a8] ss:$28 sps:$4 sm:$0xff]  }
 0x5db   :  { %1562 = vmatpush1.bf16.msra.mxu1 %v3223_v6  ;;  %v3303_v6 = vld [vmem:[%s4468_s3 + $0x274] ss:$28 sps:$4 sm:$0xff]  }
 0x5dc   :  { %2377 = vmatprep.subr.bf16.mxu1 %v3231_v9  ;;  %v3307_v9 = vld [vmem:[%s4468_s3 + $0x238] ss:$28 sps:$4 sm:$0xff]  }
 0x67c   :  { %v1352_v61 = vpop.f32.mrf.mxu1 }
 0x67d   :  { %v1353_v62 = vadd.f32 %v1352_v61, %v1302_v60  ;;  %v3271_v60 = vld [vmem:[%s4468_s3 + $0x8] ss:$28 sps:$4 sm:$0xff]   ;;  %v3279_v61 = vld [vmem:[%s4468_s3 + $0x354] ss:$28 sps:$4 sm:$0xff]  }
 0x67e   :  { %v2997_v63 = vpop.f32.mrf.mxu1 }
 0x67f   :  { %v1358_v0 = vmax.f32 %v1353_v62, 0.0  ;;  %v3277_v62 = vld [vmem:[%s4468_s3 + $0x350] ss:$28 sps:$4 sm:$0xff]   ;;  %v3285_v63 = vld [vmem:[%s4468_s3 + $0x31c] ss:$28 sps:$4 sm:$0xff]  }
 0x680   :  { %v1355_v2 = vpop.f32.mrf.mxu1 }
 0x681   :  { %v1367_v3 = vpack.c.bf16 %v1358_v0, %v1358_v0  ;;  %v3283_v0 = vld [vmem:[%s4468_s3 + $0x318] ss:$28 sps:$4 sm:$0xff]   ;;  %v3291_v2 = vld [vmem:[%s4468_s3 + $0x2e4] ss:$28 sps:$4 sm:$0xff]  }
 0x682   :  { %v2998_v4 = vpop.f32.mrf.mxu1 }
 0x683   :  { %3008 = vmatmul.mubr.msk.bf16.vlgmr.msra.gmra.mxu0 %vm1126_vm2, %v1367_v3  ;;  %v3289_v3 = vld [vmem:[%s4468_s3 + $0x2e0] ss:$28 sps:$4 sm:$0xff]   ;;  %v3297_v4 = vld [vmem:[%s4468_s3 + $0x2ac] ss:$28 sps:$4 sm:$0xff]  }
 0x684   :  { %2337 = vmatpush1.bf16.msra.mxu0 %v3226_v7  ;;  %v3301_v7 = vld [vmem:[%s4468_s3 + $0x270] ss:$28 sps:$4 sm:$0xff]  }
 0x685   :  { %2338 = vmatprep.subr.bf16.mxu0 %v3234_v10  ;;  %v3312_v10 = vld [vmem:[%s4468_s3 + $0x1fc] ss:$28 sps:$4 sm:$0xff]  }
 0x688   :  { %2339 = vmatpush1.bf16.msra.mxu0 %v3232_v11  ;;  %v3315_v11 = vld [vmem:[%s4468_s3 + $0x204] ss:$28 sps:$4 sm:$0xff]  }
 0x689   :  { %2340 = vmatprep.subr.bf16.mxu0 %v3240_v12  ;;  %v3310_v12 = vld [vmem:[%s4468_s3 + $0x1f8] ss:$28 sps:$4 sm:$0xff]  }
 0x68c   :  { %2341 = vmatpush1.bf16.msra.mxu0 %v3238_v13  ;;  %v3313_v13 = vld [vmem:[%s4468_s3 + $0x200] ss:$28 sps:$4 sm:$0xff]  }
 0x68d   :  { %2342 = vmatprep.subr.bf16.mxu0 %v3246_v14  ;;  %v3318_v14 = vld [vmem:[%s4468_s3 + $0x1c4] ss:$28 sps:$4 sm:$0xff]  }
 0x690   :  { %2343 = vmatpush1.bf16.msra.mxu0 %v3244_v17  ;;  %v3321_v17 = vld [vmem:[%s4468_s3 + $0x1cc] ss:$28 sps:$4 sm:$0xff]  }
 0x691   :  { %2344 = vmatprep.subr.bf16.mxu0 %v3252_v20  ;;  %v3316_v20 = vld [vmem:[%s4468_s3 + $0x1c0] ss:$28 sps:$4 sm:$0xff]  }
 0x694   :  { %2345 = vmatpush1.bf16.msra.mxu0 %v3250_v21  ;;  %v3319_v21 = vld [vmem:[%s4468_s3 + $0x1c8] ss:$28 sps:$4 sm:$0xff]  }
 0x695   :  { %2346 = vmatprep.subr.bf16.mxu0 %v3258_v22  ;;  %v3324_v22 = vld [vmem:[%s4468_s3 + $0x19c] ss:$28 sps:$4 sm:$0xff]  }
 0x698   :  { %2347 = vmatpush1.bf16.msra.mxu0 %v3256_v23  ;;  %v3325_v23 = vld [vmem:[%s4468_s3 + $0x360] ss:$28 sps:$4 sm:$0xff]  }
 0x699   :  { %2348 = vmatprep.subr.bf16.mxu0 %v3264_v24  ;;  %v2736_v24 = vld [vmem:[%s4470_s5 + $0x38] ss:$8 sm:$0x3] }
 0x69c   :  { %2349 = vmatpush1.bf16.msra.mxu0 %v3262_v25  ;;  %v1460_v25 = vrot.slane %v2736_v24, %v3902_v16 }
 0x69d   :  { %2350 = vmatprep.subr.bf16.mxu0 %v3270_v26  ;;  %v1464_v26 = vrot.slane %v2736_v24, %v3908_v18 }
 0x6a0   :  { %2351 = vmatpush1.bf16.msra.mxu0 %v3268_v27 }
 0x6a1   :  { %2352 = vmatprep.subr.bf16.mxu0 %v3276_v28 }
 0x6a4   :  { %2353 = vmatpush2.bf16.msra.mxu0 %v3274_v29 }
 0x6a5   :  { %2354 = vmatprep.subr.bf16.mxu0 %v3282_v30 }
 0x6a8   :  { %2355 = vmatpush2.bf16.msra.mxu0 %v3280_v31 }
 0x6a9   :  { %2356 = vmatprep.subr.bf16.mxu0 %v3288_v32 }
 0x6ac   :  { %2357 = vmatpush2.bf16.msra.mxu0 %v3286_v33 }
 0x6ad   :  { %2358 = vmatprep.subr.bf16.mxu0 %v3294_v34 }
 0x6b0   :  { %2359 = vmatpush2.bf16.msra.mxu0 %v3292_v35 }
 0x6b1   :  { %2360 = vmatprep.subr.bf16.mxu0 %v3300_v36  ;;  %v3322_v36 = vld [vmem:[%s4468_s3 + $0x198] ss:$28 sps:$4 sm:$0xff]  }
 0x6b4   :  { %2361 = vmatpush2.bf16.msra.mxu0 %v3298_v37  ;;  %v3326_v37 = vld [vmem:[%s4468_s3 + $0x1a0] ss:$28 sps:$4 sm:$0xff]  }
 0x6b5   :  { %2362 = vmatprep.subr.bf16.mxu0 %v3306_v38 }
 0x6b8   :  { %2363 = vmatpush2.bf16.msra.mxu0 %v3304_v39  ;;  %v3329_v39 = vld [vmem:[%s4468_s3 + $0x164] ss:$28 sps:$4 sm:$0xff]  }
 0x6b9   :  { %2364 = vmatprep.subr.bf16.mxu0 %v3312_v10  ;;  %v3376_v10 = vld [vmem:[%s4468_s3 + $0x27c] ss:$28 sps:$4 sm:$0xff]  }
 0x6bc   :  { %2365 = vmatpush2.bf16.msra.mxu0 %v3310_v12  ;;  %v3379_v12 = vld [vmem:[%s4468_s3 + $0x244] ss:$28 sps:$4 sm:$0xff]  }
 0x6bd   :  { %2366 = vmatprep.subr.bf16.mxu0 %v3318_v14  ;;  %v3382_v14 = vld [vmem:[%s4468_s3 + $0x20c] ss:$28 sps:$4 sm:$0xff]  }
 0x6c0   :  { %2367 = vmatpush2.bf16.msra.mxu0 %v3316_v20  ;;  %v3385_v20 = vld [vmem:[%s4468_s3 + $0x1d4] ss:$28 sps:$4 sm:$0xff]  }
 0x6c1   :  { %2418 = vmatprep.subr.bf16.mxu0 %v3324_v22 }
 0x743   :  { %v1430_v41 = vpop.f32.mrf.mxu0 }
 0x744   :  { %v1431_v42 = vadd.f32 %v1430_v41, %v1368_v40  ;;  %v3330_v40 = vld [vmem:[%s4468_s3 + $0x328] ss:$28 sps:$4 sm:$0xff]   ;;  %v3327_v41 = vld [vmem:[%s4468_s3 + $0x160] ss:$28 sps:$4 sm:$0xff]  }
 0x745   :  { %v3009_v43 = vpop.f32.mrf.mxu0 }
 0x746   :  { %v1436_v44 = vmax.f32 %v1431_v42, 0.0  ;;  %v3331_v42 = vld [vmem:[%s4468_s3 + $0x168] ss:$28 sps:$4 sm:$0xff]  }
 0x747   :  { %v1433_v45 = vpop.f32.mrf.mxu0  ;;  %v3334_v43 = vld [vmem:[%s4468_s3 + $0x12c] ss:$28 sps:$4 sm:$0xff]  }
 0x748   :  { %v1453_v47 = vpack.c.bf16 %v1436_v44, %v1436_v44  ;;  %v3335_v44 = vld [vmem:[%s4468_s3 + $0x2f0] ss:$28 sps:$4 sm:$0xff]   ;;  %v3332_v45 = vld [vmem:[%s4468_s3 + $0x128] ss:$28 sps:$4 sm:$0xff]  }
 0x749   :  { %v3010_v19 = vpop.f32.mrf.mxu0 }
 0x74a   :  { %1580 = vmatmul.mubr.bf16.vlgmr.msra.gmra.mxu1 %v1453_v47  ;;  %v3339_v47 = vld [vmem:[%s4468_s3 + $0xf4] ss:$28 sps:$4 sm:$0xff]  }
 0x74b   :  { %2378 = vmatpush1.bf16.msra.mxu1 %v3229_v46  ;;  %v3336_v46 = vld [vmem:[%s4468_s3 + $0x130] ss:$28 sps:$4 sm:$0xff]  }
 0x74c   :  { %2379 = vmatprep.subr.bf16.mxu1 %v3237_v48  ;;  %v3340_v48 = vld [vmem:[%s4468_s3 + $0x2b8] ss:$28 sps:$4 sm:$0xff]   ;;  %v3337_v19 = vld [vmem:[%s4468_s3 + $0xf0] ss:$28 sps:$4 sm:$0xff]  }
 0x74f   :  { %2380 = vmatpush1.bf16.msra.mxu1 %v3235_v49  ;;  %v3341_v49 = vld [vmem:[%s4468_s3 + $0xf8] ss:$28 sps:$4 sm:$0xff]  }
 0x750   :  { %2381 = vmatprep.subr.bf16.mxu1 %v3243_v1  ;;  %v3344_v1 = vld [vmem:[%s4468_s3 + $0xbc] ss:$28 sps:$4 sm:$0xff]  }
 0x753   :  { %2382 = vmatpush1.bf16.msra.mxu1 %v3241_v50  ;;  %v3345_v50 = vld [vmem:[%s4468_s3 + $0x280] ss:$28 sps:$4 sm:$0xff]  }
 0x754   :  { %2383 = vmatprep.subr.bf16.mxu1 %v3249_v51  ;;  %v3342_v51 = vld [vmem:[%s4468_s3 + $0xb8] ss:$28 sps:$4 sm:$0xff]  }
 0x757   :  { %2384 = vmatpush1.bf16.msra.mxu1 %v3247_v52  ;;  %v3346_v52 = vld [vmem:[%s4468_s3 + $0xc0] ss:$28 sps:$4 sm:$0xff]  }
 0x758   :  { %2385 = vmatprep.subr.bf16.mxu1 %v3255_v53  ;;  %v3349_v53 = vld [vmem:[%s4468_s3 + $0x84] ss:$28 sps:$4 sm:$0xff]  }
 0x75b   :  { %2386 = vmatpush1.bf16.msra.mxu1 %v3253_v54  ;;  %v3350_v54 = vld [vmem:[%s4468_s3 + $0x248] ss:$28 sps:$4 sm:$0xff]  }
 0x75c   :  { %2387 = vmatprep.subr.bf16.mxu1 %v3261_v55  ;;  %v3347_v55 = vld [vmem:[%s4468_s3 + $0x80] ss:$28 sps:$4 sm:$0xff]  }
 0x75f   :  { %2388 = vmatpush1.bf16.msra.mxu1 %v3259_v56  ;;  %v3351_v56 = vld [vmem:[%s4468_s3 + $0x88] ss:$28 sps:$4 sm:$0xff]  }
 0x760   :  { %2389 = vmatprep.subr.bf16.mxu1 %v3267_v57  ;;  %v3354_v57 = vld [vmem:[%s4468_s3 + $0x4c] ss:$28 sps:$4 sm:$0xff]  }
 0x763   :  { %2390 = vmatpush1.bf16.msra.mxu1 %v3265_v58  ;;  %v3355_v58 = vld [vmem:[%s4468_s3 + $0x210] ss:$28 sps:$4 sm:$0xff]  }
 0x764   :  { %2391 = vmatprep.subr.bf16.mxu1 %v3273_v59  ;;  %v3352_v59 = vld [vmem:[%s4468_s3 + $0x48] ss:$28 sps:$4 sm:$0xff]  }
 0x767   :  { %2392 = vmatpush1.bf16.msra.mxu1 %v3271_v60  ;;  %v3356_v60 = vld [vmem:[%s4468_s3 + $0x50] ss:$28 sps:$4 sm:$0xff]  }
 0x768   :  { %2393 = vmatprep.subr.bf16.mxu1 %v3279_v61  ;;  %v3359_v61 = vld [vmem:[%s4468_s3 + $0x14] ss:$28 sps:$4 sm:$0xff]  }
 0x76b   :  { %2394 = vmatpush2.bf16.msra.mxu1 %v3277_v62  ;;  %v3360_v62 = vld [vmem:[%s4468_s3 + $0x1d8] ss:$28 sps:$4 sm:$0xff]  }
 0x76c   :  { %2395 = vmatprep.subr.bf16.mxu1 %v3285_v63  ;;  %v3357_v63 = vld [vmem:[%s4468_s3 + $0x10] ss:$28 sps:$4 sm:$0xff]  }
 0x76f   :  { %2396 = vmatpush2.bf16.msra.mxu1 %v3283_v0  ;;  %v3361_v0 = vld [vmem:[%s4468_s3 + $0x18] ss:$28 sps:$4 sm:$0xff]  }
 0x770   :  { %2397 = vmatprep.subr.bf16.mxu1 %v3291_v2  ;;  %v3364_v2 = vld [vmem:[%s4468_s3 + $0x35c] ss:$28 sps:$4 sm:$0xff]  }
 0x773   :  { %2398 = vmatpush2.bf16.msra.mxu1 %v3289_v3  ;;  %v3362_v3 = vld [vmem:[%s4468_s3 + $0x358] ss:$28 sps:$4 sm:$0xff]  }
 0x774   :  { %2399 = vmatprep.subr.bf16.mxu1 %v3297_v4  ;;  %v3367_v4 = vld [vmem:[%s4468_s3 + $0x324] ss:$28 sps:$4 sm:$0xff]  }
 0x777   :  { %2400 = vmatpush2.bf16.msra.mxu1 %v3295_v5  ;;  %v3365_v5 = vld [vmem:[%s4468_s3 + $0x320] ss:$28 sps:$4 sm:$0xff]  }
 0x778   :  { %2401 = vmatprep.subr.bf16.mxu1 %v3303_v6  ;;  %v3370_v6 = vld [vmem:[%s4468_s3 + $0x2ec] ss:$28 sps:$4 sm:$0xff]  }
 0x77b   :  { %2402 = vmatpush2.bf16.msra.mxu1 %v3301_v7  ;;  %v3368_v7 = vld [vmem:[%s4468_s3 + $0x2e8] ss:$28 sps:$4 sm:$0xff]  }
 0x77c   :  { %2403 = vmatprep.subr.bf16.mxu1 %v3309_v8  ;;  %v3373_v8 = vld [vmem:[%s4468_s3 + $0x2b4] ss:$28 sps:$4 sm:$0xff]  }
 0x77f   :  { %2404 = vmatpush2.bf16.msra.mxu1 %v3307_v9  ;;  %v3371_v9 = vld [vmem:[%s4468_s3 + $0x2b0] ss:$28 sps:$4 sm:$0xff]  }
 0x780   :  { %2405 = vmatprep.subr.bf16.mxu1 %v3315_v11  ;;  %v3374_v11 = vld [vmem:[%s4468_s3 + $0x278] ss:$28 sps:$4 sm:$0xff]  }
 0x783   :  { %2406 = vmatpush2.bf16.msra.mxu1 %v3313_v13  ;;  %v3377_v13 = vld [vmem:[%s4468_s3 + $0x240] ss:$28 sps:$4 sm:$0xff]  }
 0x784   :  { %2407 = vmatprep.subr.bf16.mxu1 %v3321_v17  ;;  %v3380_v17 = vld [vmem:[%s4468_s3 + $0x208] ss:$28 sps:$4 sm:$0xff]  }
 0x787   :  { %2408 = vmatpush2.bf16.msra.mxu1 %v3319_v21  ;;  %v3383_v21 = vld [vmem:[%s4468_s3 + $0x1d0] ss:$28 sps:$4 sm:$0xff]  }
 0x788   :  { %2923 = vmatprep.subr.bf16.mxu1 %v3325_v23 }
 0x80a   :  { %v1581_v27 = vpop.f32.mrf.mxu1 }
 0x80b   :  { %v1582_v28 = vadd.f32 %v1581_v27, %v1460_v25 }
 0x80c   :  { %v1583_v29 = vpop.f32.mrf.mxu1 }
 0x80d   :  { %v1584_v30 = vadd.f32 %v1583_v29, %v1464_v26  ;;  %v1588_v31 = vmax.f32 %v1582_v28, 0.0 }
 0x80e   :  { %v1585_v32 = vpop.f32.mrf.mxu1 }
 0x80f   :  { %v1589_v33 = vmax.f32 %v1584_v30, 0.0  ;;  %v4295_v38 = vpack.c.bf16 %v1588_v31, %v1588_v31 }
 0x810   :  { %v1586_v34 = vpop.f32.mrf.mxu1 }
 0x811   :  { %v1591_v35 = vpack.c.bf16 %v1589_v33, %v1589_v33 }
 0x813   :  { %2368 = vmatprep.mubr.bf16.mxu0 %v1591_v35  ;;  %2409 = vmatprep.mubr.bf16.mxu1 %v1591_v35 }
 0x814   :  { %2369 = vmatmul.mubr.bf16.vlgmr.msra.gmra.mxu0 %v4295_v38  ;;  %2410 = vmatmul.mubr.bf16.vlgmr.msra.gmra.mxu1 %v4295_v38 }
 0x815   :  { %2419 = vmatpush1.bf16.msra.mxu0 %v3322_v36  ;;  %2924 = vmatpush3.bf16.msra.mxu1 %v3326_v37 }
 0x816   :  { %2450 = vmatprep.mubr.bf16.mxu0 %v1591_v35  ;;  %2491 = vmatprep.mubr.bf16.mxu1 %v1591_v35 }
 0x817   :  { %2420 = vmatprep.subr.bf16.mxu0 %v3329_v39  ;;  %2925 = vmatprep.subr.bf16.mxu1 %v3330_v40 }
 0x819   :  { %2421 = vmatpush1.bf16.msra.mxu0 %v3327_v41  ;;  %2926 = vmatpush3.bf16.msra.mxu1 %v3331_v42 }
 0x81a   :  { %2422 = vmatprep.subr.bf16.mxu0 %v3334_v43  ;;  %2927 = vmatprep.subr.bf16.mxu1 %v3335_v44 }
 0x81d   :  { %2423 = vmatpush1.bf16.msra.mxu0 %v3332_v45  ;;  %2928 = vmatpush3.bf16.msra.mxu1 %v3336_v46 }
 0x81e   :  { %2424 = vmatprep.subr.bf16.mxu0 %v3339_v47  ;;  %2929 = vmatprep.subr.bf16.mxu1 %v3340_v48 }
 0x821   :  { %2425 = vmatpush1.bf16.msra.mxu0 %v3337_v19  ;;  %2930 = vmatpush3.bf16.msra.mxu1 %v3341_v49 }
 0x822   :  { %2426 = vmatprep.subr.bf16.mxu0 %v3344_v1  ;;  %2931 = vmatprep.subr.bf16.mxu1 %v3345_v50 }
 0x825   :  { %2427 = vmatpush1.bf16.msra.mxu0 %v3342_v51  ;;  %2932 = vmatpush3.bf16.msra.mxu1 %v3346_v52 }
 0x826   :  { %2428 = vmatprep.subr.bf16.mxu0 %v3349_v53  ;;  %2933 = vmatprep.subr.bf16.mxu1 %v3350_v54 }
 0x829   :  { %2429 = vmatpush1.bf16.msra.mxu0 %v3347_v55  ;;  %2934 = vmatpush3.bf16.msra.mxu1 %v3351_v56 }
 0x82a   :  { %2430 = vmatprep.subr.bf16.mxu0 %v3354_v57  ;;  %2935 = vmatprep.subr.bf16.mxu1 %v3355_v58 }
 0x82d   :  { %2431 = vmatpush1.bf16.msra.mxu0 %v3352_v59  ;;  %2936 = vmatpush3.bf16.msra.mxu1 %v3356_v60 }
 0x82e   :  { %2432 = vmatprep.subr.bf16.mxu0 %v3359_v61  ;;  %2937 = vmatprep.subr.bf16.mxu1 %v3360_v62 }
 0x831   :  { %2433 = vmatpush1.bf16.msra.mxu0 %v3357_v63  ;;  %2938 = vmatpush3.bf16.msra.mxu1 %v3361_v0 }
 0x832   :  { %2434 = vmatprep.subr.bf16.mxu0 %v3364_v2 }
 0x834   :  { %2492 = vmatmul.mubr.bf16.vlgmr.msra.gmra.mxu1 %v4295_v38 }
 0x835   :  { %2435 = vmatpush2.bf16.msra.mxu0 %v3362_v3 }
 0x836   :  { %2436 = vmatprep.subr.bf16.mxu0 %v3367_v4 }
 0x839   :  { %2437 = vmatpush2.bf16.msra.mxu0 %v3365_v5 }
 0x83a   :  { %2438 = vmatprep.subr.bf16.mxu0 %v3370_v6 }
 0x83d   :  { %2439 = vmatpush2.bf16.msra.mxu0 %v3368_v7 }
 0x83e   :  { %2440 = vmatprep.subr.bf16.mxu0 %v3373_v8 }
 0x841   :  { %2441 = vmatpush2.bf16.msra.mxu0 %v3371_v9 }
 0x842   :  { %2442 = vmatprep.subr.bf16.mxu0 %v3376_v10 }
 0x845   :  { %2443 = vmatpush2.bf16.msra.mxu0 %v3374_v11 }
 0x846   :  { %2444 = vmatprep.subr.bf16.mxu0 %v3379_v12 }
 0x849   :  { %2445 = vmatpush2.bf16.msra.mxu0 %v3377_v13 }
 0x84a   :  { %2446 = vmatprep.subr.bf16.mxu0 %v3382_v14 }
 0x84d   :  { %2447 = vmatpush2.bf16.msra.mxu0 %v3380_v17 }
 0x84e   :  { %2448 = vmatprep.subr.bf16.mxu0 %v3385_v20 }
 0x851   :  { %2449 = vmatpush2.bf16.msra.mxu0 %v3383_v21 }
 0x854   :  { %2451 = vmatmul.mubr.bf16.vlgmr.msra.gmra.mxu0 %v4295_v38 }
 0x855   :  { %3427 = shalt.err (!%p3424_p4)
}
 0x856   :  { %2573 = dma.vmem_to_hbm [thread:$0]  %s2571_s13, 128, %s4472_s7, [#allocation5]  }
 0x857   :  { %s3485_s17 = smov [#allocation6]  }
 0x858   :  { %s2580_s3 = sshll.u32 %s3485_s17, 4  ;;  %s2581_s3 = int_to_ptr.vmem [resolvable:$true] %s2580_s3 }
 0x859   :  { %s3436_s18 = scalar_lea.vmem %s2581_s3, 128  ;;  %p3441_p6 = scmp.lt.s32.totalorder %s2581_s3, %s2581_s3 }
 0x85a   :  { %p3437_p5 = scmp.ne.s32.totalorder %s2581_s3, %s3436_s18  ;;  %p3442_p7 = scmp.lt.s32.totalorder %s3436_s18, %s3436_s18 }
 0x85c   :  { %p3443_p8 = por %p3442_p7, %p3441_p6 }
 0x85e   :  { %p3444_p9 = pnand %p3443_p8, %p3437_p5 }
 0x860   :  { %3447 = shalt.err (!%p3444_p9)
}
 0x861   :  { %2583 = dma.vmem_to_hbm [thread:$0]  %s2581_s3, 128, %s4473_s8, [#allocation5]   ;;  %v2753_v22 = vld [vmem:[%s4470_s5 + $0x39] ss:$8 sm:$0xf]  ;;  %v1735_v25 = vsub.s32 2, %v3899_v15 }
 0x862   :  { %v2754_v23 = vld [vmem:[%s4470_s5 + $0x39] ss:$8 sm:$0x70]  ;;  %v1739_v26 = vsub.s32 3, %v3899_v15  ;;  %v1751_v51 = vsub.s32 6, %v3899_v15  ;;  %v1743_v3 = vsub.s32 4, %v3899_v15 }
 0x863   :  { %v4445_v24 = vor.u32 %v2754_v23, %v2753_v22  ;;  %v1747_v4 = vsub.s32 5, %v3899_v15  ;;  %s3486_s5 = smov [#allocation2]  }
 0x864   :  { %s2560_s8 = sshll.u32 %s3486_s5, 4  ;;  %s2561_s8 = int_to_ptr.vmem [resolvable:$true] %s2560_s8 }
 0x865   :  { %v1728_v27 = vrot.slane %v4445_v24, %v3902_v16  ;;  %v1736_v28 = vrot.slane %v4445_v24, %v1735_v25  ;;  %v1732_v29 = vrot.slane %v4445_v24, %v3908_v18  ;;  %v1740_v30 = vrot.slane %v4445_v24, %v1739_v26  ;;  %s3456_s2 = scalar_lea.vmem %s2561_s8, 896  ;;  %p3461_p11 = scmp.lt.s32.totalorder %s2561_s8, %s2561_s8 }
 0x866   :  { %v1752_v53 = vrot.slane %v4445_v24, %v1751_v51  ;;  %v1744_v5 = vrot.slane %v4445_v24, %v1743_v3  ;;  %v1748_v6 = vrot.slane %v4445_v24, %v1747_v4  ;;  %p3457_p10 = scmp.ne.s32.totalorder %s2561_s8, %s3456_s2  ;;  %p3462_p12 = scmp.lt.s32.totalorder %s3456_s2, %s3456_s2 }
 0x868   :  { %p3463_p13 = por %p3462_p12, %p3461_p11 }
 0x86a   :  { %p3464_p0 = pnand %p3463_p13, %p3457_p10 }
 0x8d4   :  { %v2370_v31 = vpop.f32.mrf.mxu0  ;;  %v2411_v32 = vpop.f32.mrf.mxu1 }
 0x8d5   :  { %v2371_v33 = vadd.f32 %v2370_v31, %v1728_v27  ;;  %v2412_v34 = vadd.f32 %v2411_v32, %v1736_v28 }
 0x8d6   :  { %v2372_v35 = vpop.f32.mrf.mxu0  ;;  %v2413_v36 = vpop.f32.mrf.mxu1 }
 0x8d7   :  { %v2867_v37 = vmul.f32 -1.442695, %v2371_v33  ;;  %v2869_v38 = vmul.f32 -1.442695, %v2412_v34  ;;  %v2373_v39 = vadd.f32 %v2372_v35, %v1732_v29  ;;  %v2414_v40 = vadd.f32 %v2413_v36, %v1740_v30 }
 0x8d8   :  { %v2374_v41 = vpop.f32.mrf.mxu0  ;;  %v2415_v42 = vpop.f32.mrf.mxu1 }
 0x8d9   :  { %3388 = vpow2.f32 %v2867_v37  ;;  %v2868_v16 = vmul.f32 -1.442695, %v2373_v39  ;;  %v2870_v43 = vmul.f32 -1.442695, %v2414_v40 }
 0x8da   :  { %3390 = vpow2.f32 %v2869_v38  ;;  %v2375_v44 = vpop.f32.mrf.mxu0  ;;  %v2416_v18 = vpop.f32.mrf.mxu1 }
 0x8db   :  { %3392 = vpow2.f32 %v2868_v16 }
 0x8dc   :  { %3394 = vpow2.f32 %v2870_v43 }
 0x8e6   :  { %v3389_v45 = vpop.eup %3388 }
 0x8e7   :  { %v3391_v46 = vpop.eup %3390  ;;  %v2520_v47 = vadd.f32 1.0, %v3389_v45 }
 0x8e8   :  { %v3393_v48 = vpop.eup %3392  ;;  %v2522_v19 = vadd.f32 1.0, %v3391_v46 }
 0x8e9   :  { %v3395_v49 = vpop.eup %3394  ;;  %3396 = vrcp.f32 %v2520_v47  ;;  %v2521_v1 = vadd.f32 1.0, %v3393_v48 }
 0x8ea   :  { %3398 = vrcp.f32 %v2522_v19  ;;  %v2523_v50 = vadd.f32 1.0, %v3395_v49 }
 0x8eb   :  { %3400 = vrcp.f32 %v2521_v1 }
 0x8ec   :  { %3402 = vrcp.f32 %v2523_v50 }
 0x8f4   :  { %v2939_v52 = vpop.f32.mrf.mxu1 }
 0x8f6   :  { %v3397_v54 = vpop.eup %3396  ;;  %v2940_v55 = vpop.f32.mrf.mxu1 }
 0x8f7   :  { %v3399_v56 = vpop.eup %3398  ;;  %2541 = vst [vmem:[#allocation2] sm:$0xff] %v3397_v54  ;;  %v2941_v57 = vadd.f32 %v2940_v55, %v2939_v52 }
 0x8f8   :  { %v3401_v58 = vpop.eup %3400  ;;  %2543 = vst [vmem:[#allocation2 + $0x10] sm:$0xff] %v3399_v56  ;;  %v2942_v59 = vpop.f32.mrf.mxu1 }
 0x8f9   :  { %v3403_v60 = vpop.eup %3402  ;;  %2542 = vst [vmem:[#allocation2 + $0x8] sm:$0xff] %v3401_v58  ;;  %v2494_v61 = vadd.f32 %v2941_v57, %v1752_v53 }
 0x8fa   :  { %2544 = vst [vmem:[#allocation2 + $0x18] sm:$0xff] %v3403_v60  ;;  %v2943_v62 = vpop.f32.mrf.mxu1 }
 0x8fb   :  { %v2873_v63 = vmul.f32 -1.442695, %v2494_v61 }
 0x8fd   :  { %3404 = vpow2.f32 %v2873_v63 }
 0x90a   :  { %v3405_v0 = vpop.eup %3404 }
 0x90b   :  { %v2526_v2 = vadd.f32 1.0, %v3405_v0 }
 0x90d   :  { %3406 = vrcp.f32 %v2526_v2 }
 0x914   :  { %v2452_v7 = vpop.f32.mrf.mxu0 }
 0x915   :  { %v2453_v8 = vadd.f32 %v2452_v7, %v1744_v5 }
 0x916   :  { %v2454_v9 = vpop.f32.mrf.mxu0 }
 0x917   :  { %v2871_v10 = vmul.f32 -1.442695, %v2453_v8  ;;  %v2455_v11 = vadd.f32 %v2454_v9, %v1748_v6 }
 0x918   :  { %v2456_v12 = vpop.f32.mrf.mxu0 }
 0x919   :  { %3408 = vpow2.f32 %v2871_v10  ;;  %v2872_v13 = vmul.f32 -1.442695, %v2455_v11 }
 0x91a   :  { %v3407_v14 = vpop.eup %3406  ;;  %v2457_v17 = vpop.f32.mrf.mxu0 }
 0x91b   :  { %2547 = vst.msk [vmem:[#allocation2 + $0x30] sm:$0xff] %vm643_vm0, %v3407_v14  ;;  %3410 = vpow2.f32 %v2872_v13 }
 0x926   :  { %v3409_v20 = vpop.eup %3408 }
 0x927   :  { %v2524_v21 = vadd.f32 1.0, %v3409_v20 }
 0x928   :  { %v3411_v15 = vpop.eup %3410 }
 0x929   :  { %3412 = vrcp.f32 %v2524_v21  ;;  %v2525_v22 = vadd.f32 1.0, %v3411_v15 }
 0x92b   :  { %3414 = vrcp.f32 %v2525_v22 }
 0x936   :  { %v3413_v23 = vpop.eup %3412 }
 0x937   :  { %2545 = vst [vmem:[#allocation2 + $0x20] sm:$0xff] %v3413_v23 }
 0x938   :  { %v3415_v24 = vpop.eup %3414 }
 0x939   :  { %2546 = vst [vmem:[#allocation2 + $0x28] sm:$0xff] %v3415_v24 }
 0x93a   :  { %3467 = shalt.err (!%p3464_p0)
}
 0x93b   :  { %2563 = dma.vmem_to_hbm [thread:$0]  %s2561_s8, 896, %s4471_s6, [#allocation3]  }
 0x93c   :  { %3476 = dma.done.wait [#allocation3], 896  }
 0x93d   :  { %3477 = vsyncadd [#allocation3], 4294966400 }
 0x93e   :  { %3478 = dma.done.wait [#allocation5], 256  }
 0x93f   :  { %3479 = vsyncadd [#allocation5], 4294967040 }
 0x940   :  { %2593 = vsyncpa [#allocation3], 1 }
 0x941   :  { %2594 = vsyncpa [#allocation5], 1 }

</bundles_post_ra>
